<compile_context>
chip_gen: v6e
topology: v6e:2x2x1
jax: 0.10.0
libtpu: 0.0.40
codegen_flags: <defaults>
</compile_context>

<pallas_src>
import functools

import jax
import jax.numpy as jnp
from jax.experimental import pallas as pl
from jax.experimental.pallas import tpu as pltpu

EPS = 1e-5
# MXU operand dtype (accumulation stays f32 via preferred_element_type).
MATMUL_DTYPE = jnp.bfloat16
# HBM storage dtype of the streamed intermediate activations y1/y2/y3.
STORE_DTYPE = jnp.bfloat16


# --------------------------------------------------------------------------
# In-kernel helpers
# --------------------------------------------------------------------------
def _bn_affine(s_ref, g_ref, b_ref, inv_n):
    """Per-channel (scale, shift) from per-shard (sum, sum-of-squares) stats."""
    s = jnp.sum(s_ref[...].astype(jnp.float32), axis=0)      # (2, C): sum shards
    mean = s[0:1, :] * inv_n
    # E[x^2] - E[x]^2 (biased variance); clamp tiny negative cancellation.
    var = jnp.maximum(s[1:2, :] * inv_n - mean * mean, 0.0)
    scale = g_ref[...] * jax.lax.rsqrt(var + EPS)             # (1, C)
    shift = b_ref[...] - mean * scale                         # (1, C)
    return scale, shift


def _accum_stats(s_ref, y):
    """Accumulate per-channel sum / sum-of-squares of y (rows, C) into (1,2,C)."""
    stats = jnp.concatenate(
        [jnp.sum(y, axis=0, keepdims=True),
         jnp.sum(y * y, axis=0, keepdims=True)], axis=0)      # (2, C) f32
    s_ref[...] += stats.reshape(s_ref.shape)


# --------------------------------------------------------------------------
# Pass 1: conv1 (1x1) + bn1 batch statistics
# --------------------------------------------------------------------------
def conv1x1_stats_kernel(x_ref, w_ref, y_ref, s_ref):
    @pl.when(pl.program_id(1) == 0)
    def _init():
        s_ref[...] = jnp.zeros_like(s_ref)

    B, H, W, Cin = x_ref.shape
    x = x_ref[...].reshape(B * H * W, Cin).astype(MATMUL_DTYPE)
    y = jnp.dot(x, w_ref[...].astype(MATMUL_DTYPE),
                preferred_element_type=jnp.float32)            # (B*H*W, P) f32
    y_ref[...] = y.reshape(y_ref.shape).astype(y_ref.dtype)
    _accum_stats(s_ref, y)                                     # stats from f32


# --------------------------------------------------------------------------
# Pass 2: bn1 + relu + conv2 (3x3, pad=1) as 9 accumulated K=P matmuls
#          + bn2 statistics
# --------------------------------------------------------------------------
def bn_relu_conv3x3_stats_kernel(y_ref, s_in_ref, g_ref, b_ref, w_ref,
                                 o_ref, s_out_ref, *, count):
    @pl.when(pl.program_id(1) == 0)
    def _init():
        s_out_ref[...] = jnp.zeros_like(s_out_ref)

    B, H, W, P = y_ref.shape
    scale, shift = _bn_affine(s_in_ref, g_ref, b_ref, 1.0 / count)
    a = jnp.maximum(y_ref[...].astype(jnp.float32) * scale.reshape(1, 1, 1, P)
                    + shift.reshape(1, 1, 1, P), 0.0)          # (B,H,W,P) f32

    # Shifted tap of `a` with zero padding at the image border (per image).
    def tap(dh, dw):
        t = a
        if dh != 0:
            z = jnp.zeros((B, 1, W, P), t.dtype)
            t = (jnp.concatenate([t[:, 1:], z], axis=1) if dh > 0
                 else jnp.concatenate([z, t[:, :-1]], axis=1))
        if dw != 0:
            z = jnp.zeros((B, H, 1, P), t.dtype)
            t = (jnp.concatenate([t[:, :, 1:], z], axis=2) if dw > 0
                 else jnp.concatenate([z, t[:, :, :-1]], axis=2))
        return t

    # 9 accumulated MXU matmuls with K=P (no (H, W, 9P) windows tensor).
    # For tiny P a single K=9P matmul would fill the MXU better, but at real
    # channel widths (P >= 64) the accumulated form avoids the 9x VMEM temp.
    acc = jnp.zeros((B * H * W, P), jnp.float32)
    for dy in range(3):
        for dx in range(3):
            lhs = tap(dy - 1, dx - 1).reshape(B * H * W, P).astype(MATMUL_DTYPE)
            acc += jnp.dot(lhs, w_ref[dy * 3 + dx].astype(MATMUL_DTYPE),
                           preferred_element_type=jnp.float32)
    o_ref[...] = acc.reshape(o_ref.shape).astype(o_ref.dtype)
    _accum_stats(s_out_ref, acc)


# --------------------------------------------------------------------------
# Pass 3: bn2 + relu + conv3 (1x1) + bn3 statistics
# --------------------------------------------------------------------------
def bn_relu_conv1x1_stats_kernel(y_ref, s_in_ref, g_ref, b_ref, w_ref,
                                 o_ref, s_out_ref, *, count):
    @pl.when(pl.program_id(1) == 0)
    def _init():
        s_out_ref[...] = jnp.zeros_like(s_out_ref)

    B, H, W, P = y_ref.shape
    scale, shift = _bn_affine(s_in_ref, g_ref, b_ref, 1.0 / count)
    a = jnp.maximum(
        y_ref[...].astype(jnp.float32).reshape(B * H * W, P) * scale + shift, 0.0)
    out = jnp.dot(a.astype(MATMUL_DTYPE), w_ref[...].astype(MATMUL_DTYPE),
                  preferred_element_type=jnp.float32)          # (B*H*W, Cout)
    o_ref[...] = out.reshape(o_ref.shape).astype(o_ref.dtype)
    _accum_stats(s_out_ref, out)


# --------------------------------------------------------------------------
# Pass 4: bn3 + residual add + relu (no accumulator -> fully parallel grid)
# --------------------------------------------------------------------------
def bn_add_relu_kernel(y_ref, s_in_ref, g_ref, b_ref, x_ref, o_ref, *, count):
    B, H, W, C = y_ref.shape
    scale, shift = _bn_affine(s_in_ref, g_ref, b_ref, 1.0 / count)
    y = y_ref[...].astype(jnp.float32).reshape(B * H * W, C)
    x = x_ref[...].astype(jnp.float32).reshape(B * H * W, C)
    o_ref[...] = jnp.maximum(y * scale + shift + x, 0.0).reshape(o_ref.shape)


# --------------------------------------------------------------------------
# Wrapper helpers
# --------------------------------------------------------------------------
def _vmem_budget_bytes():
    """Scoped-VMEM limit: 3/4 of physical, capped at 96 MiB (48 MiB on v7x)."""
    try:
        cap = int(pltpu.get_tpu_info().vmem_capacity_bytes)
    except Exception:
        cap = 64 * 1024 * 1024
    return min((cap * 3) // 4, 96 * 1024 * 1024)


def _pick_batch_tile(n, per_image_bytes, budget_bytes):
    """Largest divisor of n whose block footprint fits the budget."""
    best = 1
    for d in range(1, n + 1):
        if n % d == 0 and d * per_image_bytes <= budget_bytes:
            best = d
    return best


# --------------------------------------------------------------------------
# Wrappers
# --------------------------------------------------------------------------
def bottleneck_pallas_nhwc(x_nhwc, params):
    """Bottleneck forward in native NHWC (no layout transposes)."""
    w1, w2, w3, g1, b1, g2, b2, g3, b3 = params
    N, H, W, Cin = x_nhwc.shape
    P = w1.shape[1]
    Cout = w3.shape[1]
    assert Cin == Cout, "downsample=None requires inplanes == planes * 4"
    count = float(N * H * W)
    w2r = w2.reshape(9, P, P)               # (kh*3+kw, in, out)
    f32 = jnp.float32

    vmem_limit = _vmem_budget_bytes()
    # Two TensorCore shards on the stat-producing passes when N splits evenly.
    num_shards = 2 if (N >= 2 and N % 2 == 0) else 1
    n_shard = N // num_shards
    # Heuristic per-image VMEM footprint (double-buffered in/out blocks plus
    # the f32 temps of the heaviest pass, conv2).
    per_img = H * W * (4 * Cin + 4 * Cout + 4 * P + 24 * P) * 2
    b_tile = _pick_batch_tile(n_shard, per_img, vmem_limit // 2)
    tiles_per_shard = n_shard // b_tile
    n_tiles = num_shards * tiles_per_shard

    # ---- BlockSpec helpers -------------------------------------------------
    def act2(c):       # activation tile over the (shard, tile) grid
        return pl.BlockSpec((b_tile, H, W, c),
                            lambda s, t: (s * tiles_per_shard + t, 0, 0, 0))

    def whole2(*shape):
        return pl.BlockSpec(tuple(shape), lambda s, t: (0,) * len(shape))

    def stats2(c):     # per-shard partial-stats block (revisited along t)
        return pl.BlockSpec((1, 2, c), lambda s, t: (s, 0, 0))

    def act1(c):       # activation tile over the flat grid (pass 4)
        return pl.BlockSpec((b_tile, H, W, c), lambda i: (i, 0, 0, 0))

    def whole1(*shape):
        return pl.BlockSpec(tuple(shape), lambda i: (0,) * len(shape))

    red = pltpu.CompilerParams(dimension_semantics=("parallel", "arbitrary"),
                               vmem_limit_bytes=vmem_limit)
    par = pltpu.CompilerParams(dimension_semantics=("parallel",),
                               vmem_limit_bytes=vmem_limit)

    # ---- Pass 1: conv1 + bn1 stats ------------------------------------------
    y1, s1 = pl.pallas_call(
        conv1x1_stats_kernel,
        grid=(num_shards, tiles_per_shard),
        in_specs=[act2(Cin), whole2(Cin, P)],
        out_specs=(act2(P), stats2(P)),
        out_shape=(jax.ShapeDtypeStruct((N, H, W, P), STORE_DTYPE),
                   jax.ShapeDtypeStruct((num_shards, 2, P), f32)),
        compiler_params=red,
    )(x_nhwc, w1)

    # ---- Pass 2: bn1 + relu + conv2 (3x3) + bn2 stats ------------------------
    y2, s2 = pl.pallas_call(
        functools.partial(bn_relu_conv3x3_stats_kernel, count=count),
        grid=(num_shards, tiles_per_shard),
        in_specs=[act2(P), whole2(num_shards, 2, P), whole2(1, P),
                  whole2(1, P), whole2(9, P, P)],
        out_specs=(act2(P), stats2(P)),
        out_shape=(jax.ShapeDtypeStruct((N, H, W, P), STORE_DTYPE),
                   jax.ShapeDtypeStruct((num_shards, 2, P), f32)),
        compiler_params=red,
    )(y1, s1, g1, b1, w2r)

    # ---- Pass 3: bn2 + relu + conv3 (1x1) + bn3 stats ------------------------
    y3, s3 = pl.pallas_call(
        functools.partial(bn_relu_conv1x1_stats_kernel, count=count),
        grid=(num_shards, tiles_per_shard),
        in_specs=[act2(P), whole2(num_shards, 2, P), whole2(1, P),
                  whole2(1, P), whole2(P, Cout)],
        out_specs=(act2(Cout), stats2(Cout)),
        out_shape=(jax.ShapeDtypeStruct((N, H, W, Cout), STORE_DTYPE),
                   jax.ShapeDtypeStruct((num_shards, 2, Cout), f32)),
        compiler_params=red,
    )(y2, s2, g2, b2, w3)

    # ---- Pass 4: bn3 + residual + relu ---------------------------------------
    out = pl.pallas_call(
        functools.partial(bn_add_relu_kernel, count=count),
        grid=(n_tiles,),
        in_specs=[act1(Cout), whole1(num_shards, 2, Cout), whole1(1, Cout),
                  whole1(1, Cout), act1(Cin)],
        out_specs=act1(Cout),
        out_shape=jax.ShapeDtypeStruct((N, H, W, Cout), f32),
        compiler_params=par,
    )(y3, s3, g3, b3, x_nhwc)
    return out


def bottleneck_pallas(x_nchw, params):
    """NCHW adapter matching the PyTorch module's input/output layout."""
    x_nhwc = jnp.transpose(x_nchw, (0, 2, 3, 1))
    out = bottleneck_pallas_nhwc(x_nhwc, params)
    return jnp.transpose(out, (0, 3, 1, 2))


def bottleneck_ref(x_nchw, params):
    """Pure-JAX f32 reference (same semantics) for the correctness check."""
    w1, w2, w3, g1, b1, g2, b2, g3, b3 = params
    x = jnp.transpose(x_nchw, (0, 2, 3, 1))
    dn = ('NHWC', 'HWIO', 'NHWC')

    def bn(y, g, b):
        m = jnp.mean(y, axis=(0, 1, 2), keepdims=True)
        v = jnp.mean((y - m) ** 2, axis=(0, 1, 2), keepdims=True)
        return ((y - m) * jax.lax.rsqrt(v + EPS) * g.reshape(1, 1, 1, -1)
                + b.reshape(1, 1, 1, -1))

    out = jax.lax.conv_general_dilated(x, w1.reshape(1, 1, *w1.shape),
                                       (1, 1), [(0, 0), (0, 0)],
                                       dimension_numbers=dn)
    out = jnp.maximum(bn(out, g1, b1), 0.0)
    out = jax.lax.conv_general_dilated(out, w2, (1, 1), [(1, 1), (1, 1)],
                                       dimension_numbers=dn)
    out = jnp.maximum(bn(out, g2, b2), 0.0)
    out = jax.lax.conv_general_dilated(out, w3.reshape(1, 1, *w3.shape),
                                       (1, 1), [(0, 0), (0, 0)],
                                       dimension_numbers=dn)
    out = bn(out, g3, b3)
    out = jnp.maximum(out + x, 0.0)
    return jnp.transpose(out, (0, 3, 1, 2))


if __name__ == "__main__":
    # Bottleneck(inplanes=32, planes=8): expansion=4 -> out channels 32 ==
    # inplanes, so downsample=None is valid and the residual add is legal.
    N, inplanes, planes, H, W = 2, 32, 8, 8, 8
    Cout = planes * 4

    keys = jax.random.split(jax.random.PRNGKey(0), 10)
    x = jax.random.normal(keys[0], (N, inplanes, H, W), jnp.float32)

    # conv weights in matmul-friendly layouts:
    #   w1: (Cin, P)        <-> PyTorch conv1.weight (P, Cin, 1, 1)
    #   w2: (3, 3, P, P)    [kH, kW, in, out] <-> conv2.weight (P, P, 3, 3)
    #   w3: (P, Cout)       <-> conv3.weight (Cout, P, 1, 1)
    w1 = 0.1 * jax.random.normal(keys[1], (inplanes, planes), jnp.float32)
    w2 = 0.1 * jax.random.normal(keys[2], (3, 3, planes, planes), jnp.float32)
    w3 = 0.1 * jax.random.normal(keys[3], (planes, Cout), jnp.float32)

    g1 = 1.0 + 0.1 * jax.random.normal(keys[4], (1, planes), jnp.float32)
    b1 = 0.1 * jax.random.normal(keys[5], (1, planes), jnp.float32)
    g2 = 1.0 + 0.1 * jax.random.normal(keys[6], (1, planes), jnp.float32)
    b2 = 0.1 * jax.random.normal(keys[7], (1, planes), jnp.float32)
    g3 = 1.0 + 0.1 * jax.random.normal(keys[8], (1, Cout), jnp.float32)
    b3 = 0.1 * jax.random.normal(keys[9], (1, Cout), jnp.float32)

    params = (w1, w2, w3, g1, b1, g2, b2, g3, b3)

    out = jax.block_until_ready(jax.jit(bottleneck_pallas)(x, params))
    ref = bottleneck_ref(x, params)
    assert out.shape == (N, Cout, H, W)
    # Tolerance accounts for bf16 intermediate storage + bf16 MXU operands
    # compared against a pure-f32 reference.
    assert jnp.allclose(out, ref, atol=5e-2, rtol=5e-2), "mismatch vs JAX reference"
    print("KERNEL_OK")
</pallas_src>

<mosaic_0001>
module attributes {stable_mosaic.version = 11 : i64} {
  func.func @bn_relu_conv1x1_stats_kernel(%arg0: i32, %arg1: i32, %arg2: memref<1x8x8x8xbf16, #tpu.memory_space<vmem>>, %arg3: memref<2x2x8xf32, #tpu.memory_space<vmem>>, %arg4: memref<1x8xf32, #tpu.memory_space<vmem>>, %arg5: memref<1x8xf32, #tpu.memory_space<vmem>>, %arg6: memref<8x32xf32, #tpu.memory_space<vmem>>, %arg7: memref<1x8x8x32xbf16, #tpu.memory_space<vmem>>, %arg8: memref<1x2x32xf32, #tpu.memory_space<vmem>>) attributes {dimension_semantics = [#tpu.dimension_semantics<parallel>, #tpu.dimension_semantics<arbitrary>], iteration_bounds = array<i64: 2, 1>, scalar_prefetch = 0 : i64, scratch_operands = 0 : i64, tpu.core_type = #tpu.core_type<tc>, window_params = [{transform_indices = @transform_0, window_bounds = array<i64: 1, 8, 8, 8>}, {pipeline_mode = #tpu.pipeline_mode<synchronous>, transform_indices = @transform_1, window_bounds = array<i64: 2, 2, 8>}, {pipeline_mode = #tpu.pipeline_mode<synchronous>, transform_indices = @transform_2, window_bounds = array<i64: 1, 8>}, {pipeline_mode = #tpu.pipeline_mode<synchronous>, transform_indices = @transform_3, window_bounds = array<i64: 1, 8>}, {pipeline_mode = #tpu.pipeline_mode<synchronous>, transform_indices = @transform_4, window_bounds = array<i64: 8, 32>}, {transform_indices = @transform_5, window_bounds = array<i64: 1, 8, 8, 32>}, {transform_indices = @transform_6, window_bounds = array<i64: 1, 2, 32>}]} {
    %c0_i32 = arith.constant 0 : i32
    %0 = arith.cmpi eq, %arg1, %c0_i32 : i32
    %1 = arith.extui %0 : i1 to i32
    %c0_i32_0 = arith.constant 0 : i32
    %2 = arith.cmpi ne, %1, %c0_i32_0 : i32
    scf.if %2 {
      %cst_31 = arith.constant 0.000000e+00 : f32
      %49 = vector.broadcast %cst_31 : f32 to vector<1x2x32xf32>
      %c0_32 = arith.constant 0 : index
      %c0_33 = arith.constant 0 : index
      %c0_34 = arith.constant 0 : index
      %50 = vector.load %arg8[%c0_32, %c0_33, %c0_34] : memref<1x2x32xf32, #tpu.memory_space<vmem>>, vector<1x2x32xf32>
      tpu.vector_store %arg8[%c0_32, %c0_33, %c0_34], %49 {strides = array<i32>} : memref<1x2x32xf32, #tpu.memory_space<vmem>>, vector<1x2x32xf32>,
    } else {
    }
    %c0 = arith.constant 0 : index
    %c0_1 = arith.constant 0 : index
    %c0_2 = arith.constant 0 : index
    %3 = vector.load %arg3[%c0, %c0_1, %c0_2] : memref<2x2x8xf32, #tpu.memory_space<vmem>>, vector<2x2x8xf32>
    %cst = arith.constant dense<0.000000e+00> : vector<2x8xf32>
    %4 = vector.multi_reduction <add>, %3, %cst [0] : vector<2x2x8xf32> to vector<2x8xf32>
    %5 = vector.extract_strided_slice %4 {offsets = [0, 0], sizes = [1, 8], strides = [1, 1]} : vector<2x8xf32> to vector<1x8xf32>
    %cst_3 = arith.constant 7.812500e-03 : f32
    %6 = vector.broadcast %cst_3 : f32 to vector<1x8xf32>
    %7 = arith.mulf %5, %6 : vector<1x8xf32>
    %8 = vector.extract_strided_slice %4 {offsets = [1, 0], sizes = [1, 8], strides = [1, 1]} : vector<2x8xf32> to vector<1x8xf32>
    %cst_4 = arith.constant 7.812500e-03 : f32
    %9 = vector.broadcast %cst_4 : f32 to vector<1x8xf32>
    %10 = arith.mulf %8, %9 : vector<1x8xf32>
    %11 = arith.mulf %7, %7 : vector<1x8xf32>
    %12 = arith.subf %10, %11 : vector<1x8xf32>
    %cst_5 = arith.constant 0.000000e+00 : f32
    %13 = vector.broadcast %cst_5 : f32 to vector<1x8xf32>
    %14 = arith.maximumf %12, %13 : vector<1x8xf32>
    %c0_6 = arith.constant 0 : index
    %c0_7 = arith.constant 0 : index
    %15 = vector.load %arg4[%c0_6, %c0_7] : memref<1x8xf32, #tpu.memory_space<vmem>>, vector<1x8xf32>
    %cst_8 = arith.constant 9.99999974E-6 : f32
    %16 = vector.broadcast %cst_8 : f32 to vector<1x8xf32>
    %17 = arith.addf %14, %16 : vector<1x8xf32>
    %18 = math.rsqrt %17 : vector<1x8xf32>
    %19 = arith.mulf %15, %18 : vector<1x8xf32>
    %c0_9 = arith.constant 0 : index
    %c0_10 = arith.constant 0 : index
    %20 = vector.load %arg5[%c0_9, %c0_10] : memref<1x8xf32, #tpu.memory_space<vmem>>, vector<1x8xf32>
    %21 = arith.mulf %7, %19 : vector<1x8xf32>
    %22 = arith.subf %20, %21 : vector<1x8xf32>
    %c0_11 = arith.constant 0 : index
    %c0_12 = arith.constant 0 : index
    %c0_13 = arith.constant 0 : index
    %c0_14 = arith.constant 0 : index
    %23 = vector.load %arg2[%c0_11, %c0_12, %c0_13, %c0_14] : memref<1x8x8x8xbf16, #tpu.memory_space<vmem>>, vector<1x8x8x8xbf16>
    %24 = arith.extf %23 : vector<1x8x8x8xbf16> to vector<1x8x8x8xf32>
    %25 = vector.shape_cast %24 : vector<1x8x8x8xf32> to vector<64x8xf32>
    %26 = vector.broadcast %19 : vector<1x8xf32> to vector<64x8xf32>
    %27 = arith.mulf %25, %26 : vector<64x8xf32>
    %28 = vector.broadcast %22 : vector<1x8xf32> to vector<64x8xf32>
    %29 = arith.addf %27, %28 : vector<64x8xf32>
    %cst_15 = arith.constant 0.000000e+00 : f32
    %30 = vector.broadcast %cst_15 : f32 to vector<64x8xf32>
    %31 = arith.maximumf %29, %30 : vector<64x8xf32>
    %32 = arith.truncf %31 : vector<64x8xf32> to vector<64x8xbf16>
    %c0_16 = arith.constant 0 : index
    %c0_17 = arith.constant 0 : index
    %33 = vector.load %arg6[%c0_16, %c0_17] : memref<8x32xf32, #tpu.memory_space<vmem>>, vector<8x32xf32>
    %34 = arith.truncf %33 : vector<8x32xf32> to vector<8x32xbf16>
    %cst_18 = arith.constant dense<0.000000e+00> : vector<64x32xf32>
    %35 = tpu.matmul %32, %34, %cst_18 {dimension_numbers = #tpu.dot_dimension_numbers<[1], [0], [0], [1], [0, 0, 1, 1], [], []>} : vector<64x8xbf16>, vector<8x32xbf16>, vector<64x32xf32> -> vector<64x32xf32>
    %36 = vector.shape_cast %35 : vector<64x32xf32> to vector<1x8x8x32xf32>
    %37 = arith.truncf %36 : vector<1x8x8x32xf32> to vector<1x8x8x32xbf16>
    %c0_19 = arith.constant 0 : index
    %c0_20 = arith.constant 0 : index
    %c0_21 = arith.constant 0 : index
    %c0_22 = arith.constant 0 : index
    %38 = vector.load %arg7[%c0_19, %c0_20, %c0_21, %c0_22] : memref<1x8x8x32xbf16, #tpu.memory_space<vmem>>, vector<1x8x8x32xbf16>
    tpu.vector_store %arg7[%c0_19, %c0_20, %c0_21, %c0_22], %37 {strides = array<i32>} : memref<1x8x8x32xbf16, #tpu.memory_space<vmem>>, vector<1x8x8x32xbf16>,
    %cst_23 = arith.constant dense<0.000000e+00> : vector<32xf32>
    %39 = vector.multi_reduction <add>, %35, %cst_23 [0] : vector<64x32xf32> to vector<32xf32>
    %40 = vector.shape_cast %39 : vector<32xf32> to vector<1x32xf32>
    %41 = arith.mulf %35, %35 : vector<64x32xf32>
    %cst_24 = arith.constant dense<0.000000e+00> : vector<32xf32>
    %42 = vector.multi_reduction <add>, %41, %cst_24 [0] : vector<64x32xf32> to vector<32xf32>
    %43 = vector.shape_cast %42 : vector<32xf32> to vector<1x32xf32>
    %44 = tpu.concatenate %40, %43 in 0 : vector<1x32xf32>, vector<1x32xf32> -> vector<2x32xf32>
    %c0_25 = arith.constant 0 : index
    %c0_26 = arith.constant 0 : index
    %c0_27 = arith.constant 0 : index
    %45 = vector.load %arg8[%c0_25, %c0_26, %c0_27] : memref<1x2x32xf32, #tpu.memory_space<vmem>>, vector<1x2x32xf32>
    %46 = vector.shape_cast %44 : vector<2x32xf32> to vector<1x2x32xf32>
    %47 = arith.addf %45, %46 : vector<1x2x32xf32>
    %c0_28 = arith.constant 0 : index
    %c0_29 = arith.constant 0 : index
    %c0_30 = arith.constant 0 : index
    %48 = vector.load %arg8[%c0_28, %c0_29, %c0_30] : memref<1x2x32xf32, #tpu.memory_space<vmem>>, vector<1x2x32xf32>
    tpu.vector_store %arg8[%c0_28, %c0_29, %c0_30], %47 {strides = array<i32>} : memref<1x2x32xf32, #tpu.memory_space<vmem>>, vector<1x2x32xf32>,
    return
  }
  func.func @transform_0(%arg0: i32, %arg1: i32) -> (i32, i32, i32, i32) {
    %c1_i32 = arith.constant 1 : i32
    %0 = arith.muli %arg0, %c1_i32 : i32
    %1 = arith.addi %0, %arg1 : i32
    %c0_i32 = arith.constant 0 : i32
    %c0_i32_0 = arith.constant 0 : i32
    %c0_i32_1 = arith.constant 0 : i32
    %c0_i32_2 = arith.constant 0 : i32
    return %1, %c0_i32, %c0_i32_0, %c0_i32_1 : i32, i32, i32, i32
  }
  func.func @transform_1(%arg0: i32, %arg1: i32) -> (i32, i32, i32) {
    %c0_i32 = arith.constant 0 : i32
    %c0_i32_0 = arith.constant 0 : i32
    %c0_i32_1 = arith.constant 0 : i32
    %c0_i32_2 = arith.constant 0 : i32
    return %c0_i32, %c0_i32_0, %c0_i32_1 : i32, i32, i32
  }
  func.func @transform_2(%arg0: i32, %arg1: i32) -> (i32, i32) {
    %c0_i32 = arith.constant 0 : i32
    %c0_i32_0 = arith.constant 0 : i32
    %c0_i32_1 = arith.constant 0 : i32
    return %c0_i32, %c0_i32_0 : i32, i32
  }
  func.func @transform_3(%arg0: i32, %arg1: i32) -> (i32, i32) {
    %c0_i32 = arith.constant 0 : i32
    %c0_i32_0 = arith.constant 0 : i32
    %c0_i32_1 = arith.constant 0 : i32
    return %c0_i32, %c0_i32_0 : i32, i32
  }
  func.func @transform_4(%arg0: i32, %arg1: i32) -> (i32, i32) {
    %c0_i32 = arith.constant 0 : i32
    %c0_i32_0 = arith.constant 0 : i32
    %c0_i32_1 = arith.constant 0 : i32
    return %c0_i32, %c0_i32_0 : i32, i32
  }
  func.func @transform_5(%arg0: i32, %arg1: i32) -> (i32, i32, i32, i32) {
    %c1_i32 = arith.constant 1 : i32
    %0 = arith.muli %arg0, %c1_i32 : i32
    %1 = arith.addi %0, %arg1 : i32
    %c0_i32 = arith.constant 0 : i32
    %c0_i32_0 = arith.constant 0 : i32
    %c0_i32_1 = arith.constant 0 : i32
    %c0_i32_2 = arith.constant 0 : i32
    return %1, %c0_i32, %c0_i32_0, %c0_i32_1 : i32, i32, i32, i32
  }
  func.func @transform_6(%arg0: i32, %arg1: i32) -> (i32, i32, i32) {
    %c0_i32 = arith.constant 0 : i32
    %c0_i32_0 = arith.constant 0 : i32
    %c0_i32_1 = arith.constant 0 : i32
    return %arg0, %c0_i32, %c0_i32_0 : i32, i32, i32
  }
}

module attributes {stable_mosaic.version = 11 : i64} {
  func.func @conv1x1_stats_kernel(%arg0: i32, %arg1: i32, %arg2: memref<1x8x8x32xf32, #tpu.memory_space<vmem>>, %arg3: memref<32x8xf32, #tpu.memory_space<vmem>>, %arg4: memref<1x8x8x8xbf16, #tpu.memory_space<vmem>>, %arg5: memref<1x2x8xf32, #tpu.memory_space<vmem>>) attributes {dimension_semantics = [#tpu.dimension_semantics<parallel>, #tpu.dimension_semantics<arbitrary>], iteration_bounds = array<i64: 2, 1>, scalar_prefetch = 0 : i64, scratch_operands = 0 : i64, tpu.core_type = #tpu.core_type<tc>, window_params = [{transform_indices = @transform_0, window_bounds = array<i64: 1, 8, 8, 32>}, {pipeline_mode = #tpu.pipeline_mode<synchronous>, transform_indices = @transform_1, window_bounds = array<i64: 32, 8>}, {transform_indices = @transform_2, window_bounds = array<i64: 1, 8, 8, 8>}, {transform_indices = @transform_3, window_bounds = array<i64: 1, 2, 8>}]} {
    %c0_i32 = arith.constant 0 : i32
    %0 = arith.cmpi eq, %arg1, %c0_i32 : i32
    %1 = arith.extui %0 : i1 to i32
    %c0_i32_0 = arith.constant 0 : i32
    %2 = arith.cmpi ne, %1, %c0_i32_0 : i32
    scf.if %2 {
      %cst_18 = arith.constant 0.000000e+00 : f32
      %22 = vector.broadcast %cst_18 : f32 to vector<1x2x8xf32>
      %c0_19 = arith.constant 0 : index
      %c0_20 = arith.constant 0 : index
      %c0_21 = arith.constant 0 : index
      %23 = vector.load %arg5[%c0_19, %c0_20, %c0_21] : memref<1x2x8xf32, #tpu.memory_space<vmem>>, vector<1x2x8xf32>
      tpu.vector_store %arg5[%c0_19, %c0_20, %c0_21], %22 {strides = array<i32>} : memref<1x2x8xf32, #tpu.memory_space<vmem>>, vector<1x2x8xf32>,
    } else {
    }
    %c0 = arith.constant 0 : index
    %c0_1 = arith.constant 0 : index
    %c0_2 = arith.constant 0 : index
    %c0_3 = arith.constant 0 : index
    %3 = vector.load %arg2[%c0, %c0_1, %c0_2, %c0_3] : memref<1x8x8x32xf32, #tpu.memory_space<vmem>>, vector<1x8x8x32xf32>
    %4 = vector.shape_cast %3 : vector<1x8x8x32xf32> to vector<64x32xf32>
    %5 = arith.truncf %4 : vector<64x32xf32> to vector<64x32xbf16>
    %c0_4 = arith.constant 0 : index
    %c0_5 = arith.constant 0 : index
    %6 = vector.load %arg3[%c0_4, %c0_5] : memref<32x8xf32, #tpu.memory_space<vmem>>, vector<32x8xf32>
    %7 = arith.truncf %6 : vector<32x8xf32> to vector<32x8xbf16>
    %cst = arith.constant dense<0.000000e+00> : vector<64x8xf32>
    %8 = tpu.matmul %5, %7, %cst {dimension_numbers = #tpu.dot_dimension_numbers<[1], [0], [0], [1], [0, 0, 1, 1], [], []>} : vector<64x32xbf16>, vector<32x8xbf16>, vector<64x8xf32> -> vector<64x8xf32>
    %9 = vector.shape_cast %8 : vector<64x8xf32> to vector<1x8x8x8xf32>
    %10 = arith.truncf %9 : vector<1x8x8x8xf32> to vector<1x8x8x8xbf16>
    %c0_6 = arith.constant 0 : index
    %c0_7 = arith.constant 0 : index
    %c0_8 = arith.constant 0 : index
    %c0_9 = arith.constant 0 : index
    %11 = vector.load %arg4[%c0_6, %c0_7, %c0_8, %c0_9] : memref<1x8x8x8xbf16, #tpu.memory_space<vmem>>, vector<1x8x8x8xbf16>
    tpu.vector_store %arg4[%c0_6, %c0_7, %c0_8, %c0_9], %10 {strides = array<i32>} : memref<1x8x8x8xbf16, #tpu.memory_space<vmem>>, vector<1x8x8x8xbf16>,
    %cst_10 = arith.constant dense<0.000000e+00> : vector<8xf32>
    %12 = vector.multi_reduction <add>, %8, %cst_10 [0] : vector<64x8xf32> to vector<8xf32>
    %13 = vector.shape_cast %12 : vector<8xf32> to vector<1x8xf32>
    %14 = arith.mulf %8, %8 : vector<64x8xf32>
    %cst_11 = arith.constant dense<0.000000e+00> : vector<8xf32>
    %15 = vector.multi_reduction <add>, %14, %cst_11 [0] : vector<64x8xf32> to vector<8xf32>
    %16 = vector.shape_cast %15 : vector<8xf32> to vector<1x8xf32>
    %17 = tpu.concatenate %13, %16 in 0 : vector<1x8xf32>, vector<1x8xf32> -> vector<2x8xf32>
    %c0_12 = arith.constant 0 : index
    %c0_13 = arith.constant 0 : index
    %c0_14 = arith.constant 0 : index
    %18 = vector.load %arg5[%c0_12, %c0_13, %c0_14] : memref<1x2x8xf32, #tpu.memory_space<vmem>>, vector<1x2x8xf32>
    %19 = vector.shape_cast %17 : vector<2x8xf32> to vector<1x2x8xf32>
    %20 = arith.addf %18, %19 : vector<1x2x8xf32>
    %c0_15 = arith.constant 0 : index
    %c0_16 = arith.constant 0 : index
    %c0_17 = arith.constant 0 : index
    %21 = vector.load %arg5[%c0_15, %c0_16, %c0_17] : memref<1x2x8xf32, #tpu.memory_space<vmem>>, vector<1x2x8xf32>
    tpu.vector_store %arg5[%c0_15, %c0_16, %c0_17], %20 {strides = array<i32>} : memref<1x2x8xf32, #tpu.memory_space<vmem>>, vector<1x2x8xf32>,
    return
  }
  func.func @transform_0(%arg0: i32, %arg1: i32) -> (i32, i32, i32, i32) {
    %c1_i32 = arith.constant 1 : i32
    %0 = arith.muli %arg0, %c1_i32 : i32
    %1 = arith.addi %0, %arg1 : i32
    %c0_i32 = arith.constant 0 : i32
    %c0_i32_0 = arith.constant 0 : i32
    %c0_i32_1 = arith.constant 0 : i32
    %c0_i32_2 = arith.constant 0 : i32
    return %1, %c0_i32, %c0_i32_0, %c0_i32_1 : i32, i32, i32, i32
  }
  func.func @transform_1(%arg0: i32, %arg1: i32) -> (i32, i32) {
    %c0_i32 = arith.constant 0 : i32
    %c0_i32_0 = arith.constant 0 : i32
    %c0_i32_1 = arith.constant 0 : i32
    return %c0_i32, %c0_i32_0 : i32, i32
  }
  func.func @transform_2(%arg0: i32, %arg1: i32) -> (i32, i32, i32, i32) {
    %c1_i32 = arith.constant 1 : i32
    %0 = arith.muli %arg0, %c1_i32 : i32
    %1 = arith.addi %0, %arg1 : i32
    %c0_i32 = arith.constant 0 : i32
    %c0_i32_0 = arith.constant 0 : i32
    %c0_i32_1 = arith.constant 0 : i32
    %c0_i32_2 = arith.constant 0 : i32
    return %1, %c0_i32, %c0_i32_0, %c0_i32_1 : i32, i32, i32, i32
  }
  func.func @transform_3(%arg0: i32, %arg1: i32) -> (i32, i32, i32) {
    %c0_i32 = arith.constant 0 : i32
    %c0_i32_0 = arith.constant 0 : i32
    %c0_i32_1 = arith.constant 0 : i32
    return %arg0, %c0_i32, %c0_i32_0 : i32, i32, i32
  }
}

module attributes {stable_mosaic.version = 11 : i64} {
  func.func @bn_relu_conv3x3_stats_kernel(%arg0: i32, %arg1: i32, %arg2: memref<1x8x8x8xbf16, #tpu.memory_space<vmem>>, %arg3: memref<2x2x8xf32, #tpu.memory_space<vmem>>, %arg4: memref<1x8xf32, #tpu.memory_space<vmem>>, %arg5: memref<1x8xf32, #tpu.memory_space<vmem>>, %arg6: memref<9x8x8xf32, #tpu.memory_space<vmem>>, %arg7: memref<1x8x8x8xbf16, #tpu.memory_space<vmem>>, %arg8: memref<1x2x8xf32, #tpu.memory_space<vmem>>) attributes {dimension_semantics = [#tpu.dimension_semantics<parallel>, #tpu.dimension_semantics<arbitrary>], iteration_bounds = array<i64: 2, 1>, scalar_prefetch = 0 : i64, scratch_operands = 0 : i64, tpu.core_type = #tpu.core_type<tc>, window_params = [{transform_indices = @transform_0, window_bounds = array<i64: 1, 8, 8, 8>}, {pipeline_mode = #tpu.pipeline_mode<synchronous>, transform_indices = @transform_1, window_bounds = array<i64: 2, 2, 8>}, {pipeline_mode = #tpu.pipeline_mode<synchronous>, transform_indices = @transform_2, window_bounds = array<i64: 1, 8>}, {pipeline_mode = #tpu.pipeline_mode<synchronous>, transform_indices = @transform_3, window_bounds = array<i64: 1, 8>}, {pipeline_mode = #tpu.pipeline_mode<synchronous>, transform_indices = @transform_4, window_bounds = array<i64: 9, 8, 8>}, {transform_indices = @transform_5, window_bounds = array<i64: 1, 8, 8, 8>}, {transform_indices = @transform_6, window_bounds = array<i64: 1, 2, 8>}]} {
    %c0_i32 = arith.constant 0 : i32
    %0 = arith.cmpi eq, %arg1, %c0_i32 : i32
    %1 = arith.extui %0 : i1 to i32
    %c0_i32_0 = arith.constant 0 : i32
    %2 = arith.cmpi ne, %1, %c0_i32_0 : i32
    scf.if %2 {
      %cst_69 = arith.constant 0.000000e+00 : f32
      %146 = vector.broadcast %cst_69 : f32 to vector<1x2x8xf32>
      %c0_70 = arith.constant 0 : index
      %c0_71 = arith.constant 0 : index
      %c0_72 = arith.constant 0 : index
      %147 = vector.load %arg8[%c0_70, %c0_71, %c0_72] : memref<1x2x8xf32, #tpu.memory_space<vmem>>, vector<1x2x8xf32>
      tpu.vector_store %arg8[%c0_70, %c0_71, %c0_72], %146 {strides = array<i32>} : memref<1x2x8xf32, #tpu.memory_space<vmem>>, vector<1x2x8xf32>,
    } else {
    }
    %c0 = arith.constant 0 : index
    %c0_1 = arith.constant 0 : index
    %c0_2 = arith.constant 0 : index
    %3 = vector.load %arg3[%c0, %c0_1, %c0_2] : memref<2x2x8xf32, #tpu.memory_space<vmem>>, vector<2x2x8xf32>
    %cst = arith.constant dense<0.000000e+00> : vector<2x8xf32>
    %4 = vector.multi_reduction <add>, %3, %cst [0] : vector<2x2x8xf32> to vector<2x8xf32>
    %5 = vector.extract_strided_slice %4 {offsets = [0, 0], sizes = [1, 8], strides = [1, 1]} : vector<2x8xf32> to vector<1x8xf32>
    %cst_3 = arith.constant 7.812500e-03 : f32
    %6 = vector.broadcast %cst_3 : f32 to vector<1x8xf32>
    %7 = arith.mulf %5, %6 : vector<1x8xf32>
    %8 = vector.extract_strided_slice %4 {offsets = [1, 0], sizes = [1, 8], strides = [1, 1]} : vector<2x8xf32> to vector<1x8xf32>
    %cst_4 = arith.constant 7.812500e-03 : f32
    %9 = vector.broadcast %cst_4 : f32 to vector<1x8xf32>
    %10 = arith.mulf %8, %9 : vector<1x8xf32>
    %11 = arith.mulf %7, %7 : vector<1x8xf32>
    %12 = arith.subf %10, %11 : vector<1x8xf32>
    %cst_5 = arith.constant 0.000000e+00 : f32
    %13 = vector.broadcast %cst_5 : f32 to vector<1x8xf32>
    %14 = arith.maximumf %12, %13 : vector<1x8xf32>
    %c0_6 = arith.constant 0 : index
    %c0_7 = arith.constant 0 : index
    %15 = vector.load %arg4[%c0_6, %c0_7] : memref<1x8xf32, #tpu.memory_space<vmem>>, vector<1x8xf32>
    %cst_8 = arith.constant 9.99999974E-6 : f32
    %16 = vector.broadcast %cst_8 : f32 to vector<1x8xf32>
    %17 = arith.addf %14, %16 : vector<1x8xf32>
    %18 = math.rsqrt %17 : vector<1x8xf32>
    %19 = arith.mulf %15, %18 : vector<1x8xf32>
    %c0_9 = arith.constant 0 : index
    %c0_10 = arith.constant 0 : index
    %20 = vector.load %arg5[%c0_9, %c0_10] : memref<1x8xf32, #tpu.memory_space<vmem>>, vector<1x8xf32>
    %21 = arith.mulf %7, %19 : vector<1x8xf32>
    %22 = arith.subf %20, %21 : vector<1x8xf32>
    %c0_11 = arith.constant 0 : index
    %c0_12 = arith.constant 0 : index
    %c0_13 = arith.constant 0 : index
    %c0_14 = arith.constant 0 : index
    %23 = vector.load %arg2[%c0_11, %c0_12, %c0_13, %c0_14] : memref<1x8x8x8xbf16, #tpu.memory_space<vmem>>, vector<1x8x8x8xbf16>
    %24 = arith.extf %23 : vector<1x8x8x8xbf16> to vector<1x8x8x8xf32>
    %25 = vector.shape_cast %19 : vector<1x8xf32> to vector<1x1x1x8xf32>
    %26 = vector.broadcast %25 : vector<1x1x1x8xf32> to vector<1x8x8x8xf32>
    %27 = arith.mulf %24, %26 : vector<1x8x8x8xf32>
    %28 = vector.shape_cast %22 : vector<1x8xf32> to vector<1x1x1x8xf32>
    %29 = vector.broadcast %28 : vector<1x1x1x8xf32> to vector<1x8x8x8xf32>
    %30 = arith.addf %27, %29 : vector<1x8x8x8xf32>
    %cst_15 = arith.constant 0.000000e+00 : f32
    %31 = vector.broadcast %cst_15 : f32 to vector<1x8x8x8xf32>
    %32 = arith.maximumf %30, %31 : vector<1x8x8x8xf32>
    %cst_16 = arith.constant 0.000000e+00 : f32
    %33 = vector.broadcast %cst_16 : f32 to vector<64x8xf32>
    %cst_17 = arith.constant 0.000000e+00 : f32
    %34 = vector.broadcast %cst_17 : f32 to vector<1x1x8x8xf32>
    %35 = vector.extract_strided_slice %32 {offsets = [0, 0, 0, 0], sizes = [1, 7, 8, 8], strides = [1, 1, 1, 1]} : vector<1x8x8x8xf32> to vector<1x7x8x8xf32>
    %36 = tpu.concatenate %34, %35 in 1 : vector<1x1x8x8xf32>, vector<1x7x8x8xf32> -> vector<1x8x8x8xf32>
    %cst_18 = arith.constant 0.000000e+00 : f32
    %37 = vector.broadcast %cst_18 : f32 to vector<1x8x1x8xf32>
    %38 = vector.extract_strided_slice %36 {offsets = [0, 0, 0, 0], sizes = [1, 8, 7, 8], strides = [1, 1, 1, 1]} : vector<1x8x8x8xf32> to vector<1x8x7x8xf32>
    %39 = tpu.concatenate %37, %38 in 2 : vector<1x8x1x8xf32>, vector<1x8x7x8xf32> -> vector<1x8x8x8xf32>
    %40 = vector.shape_cast %39 : vector<1x8x8x8xf32> to vector<64x8xf32>
    %41 = arith.truncf %40 : vector<64x8xf32> to vector<64x8xbf16>
    %c0_19 = arith.constant 0 : index
    %c0_20 = arith.constant 0 : index
    %c0_21 = arith.constant 0 : index
    %42 = vector.load %arg6[%c0_19, %c0_20, %c0_21] : memref<9x8x8xf32, #tpu.memory_space<vmem>>, vector<1x8x8xf32>
    %43 = vector.shape_cast %42 : vector<1x8x8xf32> to vector<8x8xf32>
    %44 = arith.truncf %43 : vector<8x8xf32> to vector<8x8xbf16>
    %cst_22 = arith.constant dense<0.000000e+00> : vector<64x8xf32>
    %45 = tpu.matmul %41, %44, %cst_22 {dimension_numbers = #tpu.dot_dimension_numbers<[1], [0], [0], [1], [0, 0, 1, 1], [], []>} : vector<64x8xbf16>, vector<8x8xbf16>, vector<64x8xf32> -> vector<64x8xf32>
    %46 = arith.addf %33, %45 : vector<64x8xf32>
    %cst_23 = arith.constant 0.000000e+00 : f32
    %47 = vector.broadcast %cst_23 : f32 to vector<1x1x8x8xf32>
    %48 = vector.extract_strided_slice %32 {offsets = [0, 0, 0, 0], sizes = [1, 7, 8, 8], strides = [1, 1, 1, 1]} : vector<1x8x8x8xf32> to vector<1x7x8x8xf32>
    %49 = tpu.concatenate %47, %48 in 1 : vector<1x1x8x8xf32>, vector<1x7x8x8xf32> -> vector<1x8x8x8xf32>
    %50 = vector.shape_cast %49 : vector<1x8x8x8xf32> to vector<64x8xf32>
    %51 = arith.truncf %50 : vector<64x8xf32> to vector<64x8xbf16>
    %c1 = arith.constant 1 : index
    %c0_24 = arith.constant 0 : index
    %c0_25 = arith.constant 0 : index
    %52 = vector.load %arg6[%c1, %c0_24, %c0_25] : memref<9x8x8xf32, #tpu.memory_space<vmem>>, vector<1x8x8xf32>
    %53 = vector.shape_cast %52 : vector<1x8x8xf32> to vector<8x8xf32>
    %54 = arith.truncf %53 : vector<8x8xf32> to vector<8x8xbf16>
    %cst_26 = arith.constant dense<0.000000e+00> : vector<64x8xf32>
    %55 = tpu.matmul %51, %54, %cst_26 {dimension_numbers = #tpu.dot_dimension_numbers<[1], [0], [0], [1], [0, 0, 1, 1], [], []>} : vector<64x8xbf16>, vector<8x8xbf16>, vector<64x8xf32> -> vector<64x8xf32>
    %56 = arith.addf %46, %55 : vector<64x8xf32>
    %cst_27 = arith.constant 0.000000e+00 : f32
    %57 = vector.broadcast %cst_27 : f32 to vector<1x1x8x8xf32>
    %58 = vector.extract_strided_slice %32 {offsets = [0, 0, 0, 0], sizes = [1, 7, 8, 8], strides = [1, 1, 1, 1]} : vector<1x8x8x8xf32> to vector<1x7x8x8xf32>
    %59 = tpu.concatenate %57, %58 in 1 : vector<1x1x8x8xf32>, vector<1x7x8x8xf32> -> vector<1x8x8x8xf32>
    %cst_28 = arith.constant 0.000000e+00 : f32
    %60 = vector.broadcast %cst_28 : f32 to vector<1x8x1x8xf32>
    %61 = vector.extract_strided_slice %59 {offsets = [0, 0, 1, 0], sizes = [1, 8, 7, 8], strides = [1, 1, 1, 1]} : vector<1x8x8x8xf32> to vector<1x8x7x8xf32>
    %62 = tpu.concatenate %61, %60 in 2 : vector<1x8x7x8xf32>, vector<1x8x1x8xf32> -> vector<1x8x8x8xf32>
    %63 = vector.shape_cast %62 : vector<1x8x8x8xf32> to vector<64x8xf32>
    %64 = arith.truncf %63 : vector<64x8xf32> to vector<64x8xbf16>
    %c2 = arith.constant 2 : index
    %c0_29 = arith.constant 0 : index
    %c0_30 = arith.constant 0 : index
    %65 = vector.load %arg6[%c2, %c0_29, %c0_30] : memref<9x8x8xf32, #tpu.memory_space<vmem>>, vector<1x8x8xf32>
    %66 = vector.shape_cast %65 : vector<1x8x8xf32> to vector<8x8xf32>
    %67 = arith.truncf %66 : vector<8x8xf32> to vector<8x8xbf16>
    %cst_31 = arith.constant dense<0.000000e+00> : vector<64x8xf32>
    %68 = tpu.matmul %64, %67, %cst_31 {dimension_numbers = #tpu.dot_dimension_numbers<[1], [0], [0], [1], [0, 0, 1, 1], [], []>} : vector<64x8xbf16>, vector<8x8xbf16>, vector<64x8xf32> -> vector<64x8xf32>
    %69 = arith.addf %56, %68 : vector<64x8xf32>
    %cst_32 = arith.constant 0.000000e+00 : f32
    %70 = vector.broadcast %cst_32 : f32 to vector<1x8x1x8xf32>
    %71 = vector.extract_strided_slice %32 {offsets = [0, 0, 0, 0], sizes = [1, 8, 7, 8], strides = [1, 1, 1, 1]} : vector<1x8x8x8xf32> to vector<1x8x7x8xf32>
    %72 = tpu.concatenate %70, %71 in 2 : vector<1x8x1x8xf32>, vector<1x8x7x8xf32> -> vector<1x8x8x8xf32>
    %73 = vector.shape_cast %72 : vector<1x8x8x8xf32> to vector<64x8xf32>
    %74 = arith.truncf %73 : vector<64x8xf32> to vector<64x8xbf16>
    %c3 = arith.constant 3 : index
    %c0_33 = arith.constant 0 : index
    %c0_34 = arith.constant 0 : index
    %75 = vector.load %arg6[%c3, %c0_33, %c0_34] : memref<9x8x8xf32, #tpu.memory_space<vmem>>, vector<1x8x8xf32>
    %76 = vector.shape_cast %75 : vector<1x8x8xf32> to vector<8x8xf32>
    %77 = arith.truncf %76 : vector<8x8xf32> to vector<8x8xbf16>
    %cst_35 = arith.constant dense<0.000000e+00> : vector<64x8xf32>
    %78 = tpu.matmul %74, %77, %cst_35 {dimension_numbers = #tpu.dot_dimension_numbers<[1], [0], [0], [1], [0, 0, 1, 1], [], []>} : vector<64x8xbf16>, vector<8x8xbf16>, vector<64x8xf32> -> vector<64x8xf32>
    %79 = arith.addf %69, %78 : vector<64x8xf32>
    %80 = vector.shape_cast %32 : vector<1x8x8x8xf32> to vector<64x8xf32>
    %81 = arith.truncf %80 : vector<64x8xf32> to vector<64x8xbf16>
    %c4 = arith.constant 4 : index
    %c0_36 = arith.constant 0 : index
    %c0_37 = arith.constant 0 : index
    %82 = vector.load %arg6[%c4, %c0_36, %c0_37] : memref<9x8x8xf32, #tpu.memory_space<vmem>>, vector<1x8x8xf32>
    %83 = vector.shape_cast %82 : vector<1x8x8xf32> to vector<8x8xf32>
    %84 = arith.truncf %83 : vector<8x8xf32> to vector<8x8xbf16>
    %cst_38 = arith.constant dense<0.000000e+00> : vector<64x8xf32>
    %85 = tpu.matmul %81, %84, %cst_38 {dimension_numbers = #tpu.dot_dimension_numbers<[1], [0], [0], [1], [0, 0, 1, 1], [], []>} : vector<64x8xbf16>, vector<8x8xbf16>, vector<64x8xf32> -> vector<64x8xf32>
    %86 = arith.addf %79, %85 : vector<64x8xf32>
    %cst_39 = arith.constant 0.000000e+00 : f32
    %87 = vector.broadcast %cst_39 : f32 to vector<1x8x1x8xf32>
    %88 = vector.extract_strided_slice %32 {offsets = [0, 0, 1, 0], sizes = [1, 8, 7, 8], strides = [1, 1, 1, 1]} : vector<1x8x8x8xf32> to vector<1x8x7x8xf32>
    %89 = tpu.concatenate %88, %87 in 2 : vector<1x8x7x8xf32>, vector<1x8x1x8xf32> -> vector<1x8x8x8xf32>
    %90 = vector.shape_cast %89 : vector<1x8x8x8xf32> to vector<64x8xf32>
    %91 = arith.truncf %90 : vector<64x8xf32> to vector<64x8xbf16>
    %c5 = arith.constant 5 : index
    %c0_40 = arith.constant 0 : index
    %c0_41 = arith.constant 0 : index
    %92 = vector.load %arg6[%c5, %c0_40, %c0_41] : memref<9x8x8xf32, #tpu.memory_space<vmem>>, vector<1x8x8xf32>
    %93 = vector.shape_cast %92 : vector<1x8x8xf32> to vector<8x8xf32>
    %94 = arith.truncf %93 : vector<8x8xf32> to vector<8x8xbf16>
    %cst_42 = arith.constant dense<0.000000e+00> : vector<64x8xf32>
    %95 = tpu.matmul %91, %94, %cst_42 {dimension_numbers = #tpu.dot_dimension_numbers<[1], [0], [0], [1], [0, 0, 1, 1], [], []>} : vector<64x8xbf16>, vector<8x8xbf16>, vector<64x8xf32> -> vector<64x8xf32>
    %96 = arith.addf %86, %95 : vector<64x8xf32>
    %cst_43 = arith.constant 0.000000e+00 : f32
    %97 = vector.broadcast %cst_43 : f32 to vector<1x1x8x8xf32>
    %98 = vector.extract_strided_slice %32 {offsets = [0, 1, 0, 0], sizes = [1, 7, 8, 8], strides = [1, 1, 1, 1]} : vector<1x8x8x8xf32> to vector<1x7x8x8xf32>
    %99 = tpu.concatenate %98, %97 in 1 : vector<1x7x8x8xf32>, vector<1x1x8x8xf32> -> vector<1x8x8x8xf32>
    %cst_44 = arith.constant 0.000000e+00 : f32
    %100 = vector.broadcast %cst_44 : f32 to vector<1x8x1x8xf32>
    %101 = vector.extract_strided_slice %99 {offsets = [0, 0, 0, 0], sizes = [1, 8, 7, 8], strides = [1, 1, 1, 1]} : vector<1x8x8x8xf32> to vector<1x8x7x8xf32>
    %102 = tpu.concatenate %100, %101 in 2 : vector<1x8x1x8xf32>, vector<1x8x7x8xf32> -> vector<1x8x8x8xf32>
    %103 = vector.shape_cast %102 : vector<1x8x8x8xf32> to vector<64x8xf32>
    %104 = arith.truncf %103 : vector<64x8xf32> to vector<64x8xbf16>
    %c6 = arith.constant 6 : index
    %c0_45 = arith.constant 0 : index
    %c0_46 = arith.constant 0 : index
    %105 = vector.load %arg6[%c6, %c0_45, %c0_46] : memref<9x8x8xf32, #tpu.memory_space<vmem>>, vector<1x8x8xf32>
    %106 = vector.shape_cast %105 : vector<1x8x8xf32> to vector<8x8xf32>
    %107 = arith.truncf %106 : vector<8x8xf32> to vector<8x8xbf16>
    %cst_47 = arith.constant dense<0.000000e+00> : vector<64x8xf32>
    %108 = tpu.matmul %104, %107, %cst_47 {dimension_numbers = #tpu.dot_dimension_numbers<[1], [0], [0], [1], [0, 0, 1, 1], [], []>} : vector<64x8xbf16>, vector<8x8xbf16>, vector<64x8xf32> -> vector<64x8xf32>
    %109 = arith.addf %96, %108 : vector<64x8xf32>
    %cst_48 = arith.constant 0.000000e+00 : f32
    %110 = vector.broadcast %cst_48 : f32 to vector<1x1x8x8xf32>
    %111 = vector.extract_strided_slice %32 {offsets = [0, 1, 0, 0], sizes = [1, 7, 8, 8], strides = [1, 1, 1, 1]} : vector<1x8x8x8xf32> to vector<1x7x8x8xf32>
    %112 = tpu.concatenate %111, %110 in 1 : vector<1x7x8x8xf32>, vector<1x1x8x8xf32> -> vector<1x8x8x8xf32>
    %113 = vector.shape_cast %112 : vector<1x8x8x8xf32> to vector<64x8xf32>
    %114 = arith.truncf %113 : vector<64x8xf32> to vector<64x8xbf16>
    %c7 = arith.constant 7 : index
    %c0_49 = arith.constant 0 : index
    %c0_50 = arith.constant 0 : index
    %115 = vector.load %arg6[%c7, %c0_49, %c0_50] : memref<9x8x8xf32, #tpu.memory_space<vmem>>, vector<1x8x8xf32>
    %116 = vector.shape_cast %115 : vector<1x8x8xf32> to vector<8x8xf32>
    %117 = arith.truncf %116 : vector<8x8xf32> to vector<8x8xbf16>
    %cst_51 = arith.constant dense<0.000000e+00> : vector<64x8xf32>
    %118 = tpu.matmul %114, %117, %cst_51 {dimension_numbers = #tpu.dot_dimension_numbers<[1], [0], [0], [1], [0, 0, 1, 1], [], []>} : vector<64x8xbf16>, vector<8x8xbf16>, vector<64x8xf32> -> vector<64x8xf32>
    %119 = arith.addf %109, %118 : vector<64x8xf32>
    %cst_52 = arith.constant 0.000000e+00 : f32
    %120 = vector.broadcast %cst_52 : f32 to vector<1x1x8x8xf32>
    %121 = vector.extract_strided_slice %32 {offsets = [0, 1, 0, 0], sizes = [1, 7, 8, 8], strides = [1, 1, 1, 1]} : vector<1x8x8x8xf32> to vector<1x7x8x8xf32>
    %122 = tpu.concatenate %121, %120 in 1 : vector<1x7x8x8xf32>, vector<1x1x8x8xf32> -> vector<1x8x8x8xf32>
    %cst_53 = arith.constant 0.000000e+00 : f32
    %123 = vector.broadcast %cst_53 : f32 to vector<1x8x1x8xf32>
    %124 = vector.extract_strided_slice %122 {offsets = [0, 0, 1, 0], sizes = [1, 8, 7, 8], strides = [1, 1, 1, 1]} : vector<1x8x8x8xf32> to vector<1x8x7x8xf32>
    %125 = tpu.concatenate %124, %123 in 2 : vector<1x8x7x8xf32>, vector<1x8x1x8xf32> -> vector<1x8x8x8xf32>
    %126 = vector.shape_cast %125 : vector<1x8x8x8xf32> to vector<64x8xf32>
    %127 = arith.truncf %126 : vector<64x8xf32> to vector<64x8xbf16>
    %c8 = arith.constant 8 : index
    %c0_54 = arith.constant 0 : index
    %c0_55 = arith.constant 0 : index
    %128 = vector.load %arg6[%c8, %c0_54, %c0_55] : memref<9x8x8xf32, #tpu.memory_space<vmem>>, vector<1x8x8xf32>
    %129 = vector.shape_cast %128 : vector<1x8x8xf32> to vector<8x8xf32>
    %130 = arith.truncf %129 : vector<8x8xf32> to vector<8x8xbf16>
    %cst_56 = arith.constant dense<0.000000e+00> : vector<64x8xf32>
    %131 = tpu.matmul %127, %130, %cst_56 {dimension_numbers = #tpu.dot_dimension_numbers<[1], [0], [0], [1], [0, 0, 1, 1], [], []>} : vector<64x8xbf16>, vector<8x8xbf16>, vector<64x8xf32> -> vector<64x8xf32>
    %132 = arith.addf %119, %131 : vector<64x8xf32>
    %133 = vector.shape_cast %132 : vector<64x8xf32> to vector<1x8x8x8xf32>
    %134 = arith.truncf %133 : vector<1x8x8x8xf32> to vector<1x8x8x8xbf16>
    %c0_57 = arith.constant 0 : index
    %c0_58 = arith.constant 0 : index
    %c0_59 = arith.constant 0 : index
    %c0_60 = arith.constant 0 : index
    %135 = vector.load %arg7[%c0_57, %c0_58, %c0_59, %c0_60] : memref<1x8x8x8xbf16, #tpu.memory_space<vmem>>, vector<1x8x8x8xbf16>
    tpu.vector_store %arg7[%c0_57, %c0_58, %c0_59, %c0_60], %134 {strides = array<i32>} : memref<1x8x8x8xbf16, #tpu.memory_space<vmem>>, vector<1x8x8x8xbf16>,
    %cst_61 = arith.constant dense<0.000000e+00> : vector<8xf32>
    %136 = vector.multi_reduction <add>, %132, %cst_61 [0] : vector<64x8xf32> to vector<8xf32>
    %137 = vector.shape_cast %136 : vector<8xf32> to vector<1x8xf32>
    %138 = arith.mulf %132, %132 : vector<64x8xf32>
    %cst_62 = arith.constant dense<0.000000e+00> : vector<8xf32>
    %139 = vector.multi_reduction <add>, %138, %cst_62 [0] : vector<64x8xf32> to vector<8xf32>
    %140 = vector.shape_cast %139 : vector<8xf32> to vector<1x8xf32>
    %141 = tpu.concatenate %137, %140 in 0 : vector<1x8xf32>, vector<1x8xf32> -> vector<2x8xf32>
    %c0_63 = arith.constant 0 : index
    %c0_64 = arith.constant 0 : index
    %c0_65 = arith.constant 0 : index
    %142 = vector.load %arg8[%c0_63, %c0_64, %c0_65] : memref<1x2x8xf32, #tpu.memory_space<vmem>>, vector<1x2x8xf32>
    %143 = vector.shape_cast %141 : vector<2x8xf32> to vector<1x2x8xf32>
    %144 = arith.addf %142, %143 : vector<1x2x8xf32>
    %c0_66 = arith.constant 0 : index
    %c0_67 = arith.constant 0 : index
    %c0_68 = arith.constant 0 : index
    %145 = vector.load %arg8[%c0_66, %c0_67, %c0_68] : memref<1x2x8xf32, #tpu.memory_space<vmem>>, vector<1x2x8xf32>
    tpu.vector_store %arg8[%c0_66, %c0_67, %c0_68], %144 {strides = array<i32>} : memref<1x2x8xf32, #tpu.memory_space<vmem>>, vector<1x2x8xf32>,
    return
  }
  func.func @transform_0(%arg0: i32, %arg1: i32) -> (i32, i32, i32, i32) {
    %c1_i32 = arith.constant 1 : i32
    %0 = arith.muli %arg0, %c1_i32 : i32
    %1 = arith.addi %0, %arg1 : i32
    %c0_i32 = arith.constant 0 : i32
    %c0_i32_0 = arith.constant 0 : i32
    %c0_i32_1 = arith.constant 0 : i32
    %c0_i32_2 = arith.constant 0 : i32
    return %1, %c0_i32, %c0_i32_0, %c0_i32_1 : i32, i32, i32, i32
  }
  func.func @transform_1(%arg0: i32, %arg1: i32) -> (i32, i32, i32) {
    %c0_i32 = arith.constant 0 : i32
    %c0_i32_0 = arith.constant 0 : i32
    %c0_i32_1 = arith.constant 0 : i32
    %c0_i32_2 = arith.constant 0 : i32
    return %c0_i32, %c0_i32_0, %c0_i32_1 : i32, i32, i32
  }
  func.func @transform_2(%arg0: i32, %arg1: i32) -> (i32, i32) {
    %c0_i32 = arith.constant 0 : i32
    %c0_i32_0 = arith.constant 0 : i32
    %c0_i32_1 = arith.constant 0 : i32
    return %c0_i32, %c0_i32_0 : i32, i32
  }
  func.func @transform_3(%arg0: i32, %arg1: i32) -> (i32, i32) {
    %c0_i32 = arith.constant 0 : i32
    %c0_i32_0 = arith.constant 0 : i32
    %c0_i32_1 = arith.constant 0 : i32
    return %c0_i32, %c0_i32_0 : i32, i32
  }
  func.func @transform_4(%arg0: i32, %arg1: i32) -> (i32, i32, i32) {
    %c0_i32 = arith.constant 0 : i32
    %c0_i32_0 = arith.constant 0 : i32
    %c0_i32_1 = arith.constant 0 : i32
    %c0_i32_2 = arith.constant 0 : i32
    return %c0_i32, %c0_i32_0, %c0_i32_1 : i32, i32, i32
  }
  func.func @transform_5(%arg0: i32, %arg1: i32) -> (i32, i32, i32, i32) {
    %c1_i32 = arith.constant 1 : i32
    %0 = arith.muli %arg0, %c1_i32 : i32
    %1 = arith.addi %0, %arg1 : i32
    %c0_i32 = arith.constant 0 : i32
    %c0_i32_0 = arith.constant 0 : i32
    %c0_i32_1 = arith.constant 0 : i32
    %c0_i32_2 = arith.constant 0 : i32
    return %1, %c0_i32, %c0_i32_0, %c0_i32_1 : i32, i32, i32, i32
  }
  func.func @transform_6(%arg0: i32, %arg1: i32) -> (i32, i32, i32) {
    %c0_i32 = arith.constant 0 : i32
    %c0_i32_0 = arith.constant 0 : i32
    %c0_i32_1 = arith.constant 0 : i32
    return %arg0, %c0_i32, %c0_i32_0 : i32, i32, i32
  }
}

module attributes {stable_mosaic.version = 11 : i64} {
  func.func @bn_add_relu_kernel(%arg0: i32, %arg1: memref<1x8x8x32xbf16, #tpu.memory_space<vmem>>, %arg2: memref<2x2x32xf32, #tpu.memory_space<vmem>>, %arg3: memref<1x32xf32, #tpu.memory_space<vmem>>, %arg4: memref<1x32xf32, #tpu.memory_space<vmem>>, %arg5: memref<1x8x8x32xf32, #tpu.memory_space<vmem>>, %arg6: memref<1x8x8x32xf32, #tpu.memory_space<vmem>>) attributes {dimension_semantics = [#tpu.dimension_semantics<parallel>], iteration_bounds = array<i64: 2>, scalar_prefetch = 0 : i64, scratch_operands = 0 : i64, tpu.core_type = #tpu.core_type<tc>, window_params = [{transform_indices = @transform_0, window_bounds = array<i64: 1, 8, 8, 32>}, {pipeline_mode = #tpu.pipeline_mode<synchronous>, transform_indices = @transform_1, window_bounds = array<i64: 2, 2, 32>}, {pipeline_mode = #tpu.pipeline_mode<synchronous>, transform_indices = @transform_2, window_bounds = array<i64: 1, 32>}, {pipeline_mode = #tpu.pipeline_mode<synchronous>, transform_indices = @transform_3, window_bounds = array<i64: 1, 32>}, {transform_indices = @transform_4, window_bounds = array<i64: 1, 8, 8, 32>}, {transform_indices = @transform_5, window_bounds = array<i64: 1, 8, 8, 32>}]} {
    %c0 = arith.constant 0 : index
    %c0_0 = arith.constant 0 : index
    %c0_1 = arith.constant 0 : index
    %0 = vector.load %arg2[%c0, %c0_0, %c0_1] : memref<2x2x32xf32, #tpu.memory_space<vmem>>, vector<2x2x32xf32>
    %cst = arith.constant dense<0.000000e+00> : vector<2x32xf32>
    %1 = vector.multi_reduction <add>, %0, %cst [0] : vector<2x2x32xf32> to vector<2x32xf32>
    %2 = vector.extract_strided_slice %1 {offsets = [0, 0], sizes = [1, 32], strides = [1, 1]} : vector<2x32xf32> to vector<1x32xf32>
    %cst_2 = arith.constant 7.812500e-03 : f32
    %3 = vector.broadcast %cst_2 : f32 to vector<1x32xf32>
    %4 = arith.mulf %2, %3 : vector<1x32xf32>
    %5 = vector.extract_strided_slice %1 {offsets = [1, 0], sizes = [1, 32], strides = [1, 1]} : vector<2x32xf32> to vector<1x32xf32>
    %cst_3 = arith.constant 7.812500e-03 : f32
    %6 = vector.broadcast %cst_3 : f32 to vector<1x32xf32>
    %7 = arith.mulf %5, %6 : vector<1x32xf32>
    %8 = arith.mulf %4, %4 : vector<1x32xf32>
    %9 = arith.subf %7, %8 : vector<1x32xf32>
    %cst_4 = arith.constant 0.000000e+00 : f32
    %10 = vector.broadcast %cst_4 : f32 to vector<1x32xf32>
    %11 = arith.maximumf %9, %10 : vector<1x32xf32>
    %c0_5 = arith.constant 0 : index
    %c0_6 = arith.constant 0 : index
    %12 = vector.load %arg3[%c0_5, %c0_6] : memref<1x32xf32, #tpu.memory_space<vmem>>, vector<1x32xf32>
    %cst_7 = arith.constant 9.99999974E-6 : f32
    %13 = vector.broadcast %cst_7 : f32 to vector<1x32xf32>
    %14 = arith.addf %11, %13 : vector<1x32xf32>
    %15 = math.rsqrt %14 : vector<1x32xf32>
    %16 = arith.mulf %12, %15 : vector<1x32xf32>
    %c0_8 = arith.constant 0 : index
    %c0_9 = arith.constant 0 : index
    %17 = vector.load %arg4[%c0_8, %c0_9] : memref<1x32xf32, #tpu.memory_space<vmem>>, vector<1x32xf32>
    %18 = arith.mulf %4, %16 : vector<1x32xf32>
    %19 = arith.subf %17, %18 : vector<1x32xf32>
    %c0_10 = arith.constant 0 : index
    %c0_11 = arith.constant 0 : index
    %c0_12 = arith.constant 0 : index
    %c0_13 = arith.constant 0 : index
    %20 = vector.load %arg1[%c0_10, %c0_11, %c0_12, %c0_13] : memref<1x8x8x32xbf16, #tpu.memory_space<vmem>>, vector<1x8x8x32xbf16>
    %21 = arith.extf %20 : vector<1x8x8x32xbf16> to vector<1x8x8x32xf32>
    %22 = vector.shape_cast %21 : vector<1x8x8x32xf32> to vector<64x32xf32>
    %c0_14 = arith.constant 0 : index
    %c0_15 = arith.constant 0 : index
    %c0_16 = arith.constant 0 : index
    %c0_17 = arith.constant 0 : index
    %23 = vector.load %arg5[%c0_14, %c0_15, %c0_16, %c0_17] : memref<1x8x8x32xf32, #tpu.memory_space<vmem>>, vector<1x8x8x32xf32>
    %24 = vector.shape_cast %23 : vector<1x8x8x32xf32> to vector<64x32xf32>
    %25 = vector.broadcast %16 : vector<1x32xf32> to vector<64x32xf32>
    %26 = arith.mulf %22, %25 : vector<64x32xf32>
    %27 = vector.broadcast %19 : vector<1x32xf32> to vector<64x32xf32>
    %28 = arith.addf %26, %27 : vector<64x32xf32>
    %29 = arith.addf %28, %24 : vector<64x32xf32>
    %cst_18 = arith.constant 0.000000e+00 : f32
    %30 = vector.broadcast %cst_18 : f32 to vector<64x32xf32>
    %31 = arith.maximumf %29, %30 : vector<64x32xf32>
    %32 = vector.shape_cast %31 : vector<64x32xf32> to vector<1x8x8x32xf32>
    %c0_19 = arith.constant 0 : index
    %c0_20 = arith.constant 0 : index
    %c0_21 = arith.constant 0 : index
    %c0_22 = arith.constant 0 : index
    %33 = vector.load %arg6[%c0_19, %c0_20, %c0_21, %c0_22] : memref<1x8x8x32xf32, #tpu.memory_space<vmem>>, vector<1x8x8x32xf32>
    tpu.vector_store %arg6[%c0_19, %c0_20, %c0_21, %c0_22], %32 {strides = array<i32>} : memref<1x8x8x32xf32, #tpu.memory_space<vmem>>, vector<1x8x8x32xf32>,
    return
  }
  func.func @transform_0(%arg0: i32) -> (i32, i32, i32, i32) {
    %c0_i32 = arith.constant 0 : i32
    %c0_i32_0 = arith.constant 0 : i32
    %c0_i32_1 = arith.constant 0 : i32
    %c0_i32_2 = arith.constant 0 : i32
    return %arg0, %c0_i32, %c0_i32_0, %c0_i32_1 : i32, i32, i32, i32
  }
  func.func @transform_1(%arg0: i32) -> (i32, i32, i32) {
    %c0_i32 = arith.constant 0 : i32
    %c0_i32_0 = arith.constant 0 : i32
    %c0_i32_1 = arith.constant 0 : i32
    %c0_i32_2 = arith.constant 0 : i32
    return %c0_i32, %c0_i32_0, %c0_i32_1 : i32, i32, i32
  }
  func.func @transform_2(%arg0: i32) -> (i32, i32) {
    %c0_i32 = arith.constant 0 : i32
    %c0_i32_0 = arith.constant 0 : i32
    %c0_i32_1 = arith.constant 0 : i32
    return %c0_i32, %c0_i32_0 : i32, i32
  }
  func.func @transform_3(%arg0: i32) -> (i32, i32) {
    %c0_i32 = arith.constant 0 : i32
    %c0_i32_0 = arith.constant 0 : i32
    %c0_i32_1 = arith.constant 0 : i32
    return %c0_i32, %c0_i32_0 : i32, i32
  }
  func.func @transform_4(%arg0: i32) -> (i32, i32, i32, i32) {
    %c0_i32 = arith.constant 0 : i32
    %c0_i32_0 = arith.constant 0 : i32
    %c0_i32_1 = arith.constant 0 : i32
    %c0_i32_2 = arith.constant 0 : i32
    return %arg0, %c0_i32, %c0_i32_0, %c0_i32_1 : i32, i32, i32, i32
  }
  func.func @transform_5(%arg0: i32) -> (i32, i32, i32, i32) {
    %c0_i32 = arith.constant 0 : i32
    %c0_i32_0 = arith.constant 0 : i32
    %c0_i32_1 = arith.constant 0 : i32
    %c0_i32_2 = arith.constant 0 : i32
    return %arg0, %c0_i32, %c0_i32_0, %c0_i32_1 : i32, i32, i32, i32
  }
}

</mosaic_0001>

<bundles_post_ra>
// kernel: bottleneck_pallas.6
= control target key start
LH: loop header
LB: loop body
LE: loop exit
PB: predicated region body
PF: predicated region fallthrough
CT: control target
= control target key end

     0   :  { %s788_s21 = smov 0   ;;  %s790_s22 = smov 0   ;;  %s892_s0 = inlined_call_operand.vmem [shape: bf16[2,8,8,8], index: 0, kind: input, shape index: {}]   ;;  %s893_s1 = inlined_call_operand.vmem [shape: f32[2,2,8], index: 1, kind: input, shape index: {}]   ;;  %s894_s2 = inlined_call_operand.vmem [shape: f32[1,8], index: 2, kind: input, shape index: {}]   ;;  %s895_s3 = inlined_call_operand.vmem [shape: f32[1,8], index: 3, kind: input, shape index: {}]   ;;  %s896_s4 = inlined_call_operand.vmem [shape: f32[8,32], index: 4, kind: input, shape index: {}]   ;;  %s897_s5 = inlined_call_operand.vmem [shape: bf16[2,8,8,32], index: 5, kind: output, shape index: {0}]   ;;  %s898_s6 = inlined_call_operand.vmem [shape: f32[2,2,32], index: 6, kind: output, shape index: {1}]  }
   0x1   :  { %s792_s23 = smov 0  }
   0x2 LB: > { %s29_s24 = sadd.s32 1, %s745_s22  ;;  %p647_p0 = scmp.ge.s32.totalorder %s749_s23, 1  ;;  %s749_s23 = sphi %s792_s23, %s17_s23   ;;  %s745_s22 = sphi %s790_s22, %s900_s22   ;;  %s741_s21 = sphi %s788_s21, %s899_s21  }
   0x3   : > { %p31_p1 = scmp.ge.s32.totalorder %s29_s24, 2  ;;  %p233_p2 = scmp.lt.s32.totalorder %s749_s23, 3 }
   0x5   : > { %s902_s24 = smov (%p31_p1, %s29_s24), 0  ;;  %p234_p3 = pnand %p647_p0, %p233_p2 }
   0x6   : > { %p270_p4 = scmp.lt.s32.totalorder (!%p234_p3), %s741_s21, 1 }
   0x7   : > { %237 = sbr.rel (%p234_p3) target bundleno = 296 (0x128), region = 40 }
   0xc   : > { %v387_v0 = vld [vmem:[%s896_s4] sm:$0xff]  ;;  %vm402_vm0 = vcmask 1043456   ;;  %vm296_vm1 = vcmask 58368   ;;  %s904_s21 = smov (!%p270_p4, %s741_s21), 1  ;;  %vm292_vm2 = vcmask 254976   ;;  %v751_v9 = vmov 0.0  }
   0xd   : > { %v388_v1 = vpack.c.bf16 %v387_v0, %v387_v0  ;;  %v294_v2 = vld [vmem:[%s893_s1] sm:$0x3]  ;;  %v295_v3 = vld [vmem:[%s893_s1 + $0x2] sm:$0x3]  ;;  %s652_s7 = sshll.u32 %s904_s21, 1  ;;  %v314_v17 = vlaneseq  ;;  %s659_s11 = sshll.u32 %s904_s21, 5 }
   0xe   : > { %v297_v4 = vsel %vm296_vm1, %v294_v2, 0.0  ;;  %v298_v5 = vsel %vm296_vm1, %v295_v3, 0.0  ;;  %s821_s10 = scalar_lea.vmem %s898_s6, %s652_s7  ;;  %v752_v15 = vmov 1966171168   ;;  %s274_s14 = scalar_lea.vmem %s892_s0, %s659_s11  ;;  %v307_v24 = vld [vmem:[%s894_s2] sm:$0x1] }
   0xf   : > { %697 = vmatprep.subr.msk.bf16.mxu0 %vm402_vm0, %v388_v1  ;;  %v404_v6 = vsel %vm402_vm0, %v388_v1, 0  ;;  %698 = vmatprep.subr.msk.bf16.mxu1 %vm402_vm0, %v388_v1  ;;  %v299_v7 = vadd.f32 %v298_v5, %v297_v4  ;;  %293 = vst.msk [vmem:[%s821_s10] sm:$0x3] %vm292_vm2, %v751_v9  ;;  %v312_v16 = vunpack.c.l.s4 %v752_v15  ;;  %v315_v19 = vshrl.u32 %v314_v17, 7  ;;  %v662_v25 = vld [vmem:[%s274_s14] sm:$0xff]   ;;  %v677_v26 = vld [vmem:[%s274_s14 + $0x8] sm:$0xff]   ;;  %s846_s25 = scalar_lea.vmem %s897_s5, %s659_s11 }
  0x10   : > { %686 = vmatpush3.bf16.msra.mxu0 %v404_v6  ;;  %696 = vmatpush3.bf16.msra.mxu1 %v404_v6  ;;  %v678_v29 = vld [vmem:[%s274_s14 + $0x10] sm:$0xff]   ;;  %v679_v30 = vld [vmem:[%s274_s14 + $0x18] sm:$0xff]   ;;  %v663_v32 = vunpack.c.l.bf16 %v662_v25  ;;  %v664_v33 = vunpack.c.h.bf16 %v662_v25  ;;  %v667_v34 = vunpack.c.l.bf16 %v677_v26  ;;  %v328_v35 = vld [vmem:[%s895_s3] sm:$0x1]  ;;  %v668_v36 = vunpack.c.h.bf16 %v677_v26 }
  0x11   : > { %v300_v8 = vmul.f32 0.0078125, %v299_v7  ;;  %v313_v18 = vunpack.c.0.s8 %v312_v16  ;;  %v350_v28 = vsub.s32 0, %v315_v19  ;;  %v671_v37 = vunpack.c.l.bf16 %v678_v29 }
  0x12   : > { %v672_v38 = vunpack.c.h.bf16 %v678_v29  ;;  %v675_v39 = vunpack.c.l.bf16 %v679_v30  ;;  %v676_v42 = vunpack.c.h.bf16 %v679_v30  ;;  %vm389_vm3 = vcmask 64512  }
  0x13   : > { %v301_v10 = vmul.f32 %v300_v8, %v300_v8  ;;  %v316_v20 = vsub.s32 %v313_v18, %v315_v19  ;;  %vm479_vm4 = vcmask 257024   ;;  %vm488_vm5 = vcmask 261120  }
  0x14   : > { %vm539_vm6 = vcmask 1040384  }
  0x15   : > { %v303_v11 = vrot.slane %v301_v10, 7 }
  0x17   : > { %v305_v12 = vsub.f32 %v300_v8, %v303_v11 }
  0x19   : > { %v306_v13 = vmax.f32 %v305_v12, 0.0 }
  0x1b   : > { %v308_v14 = vadd.f32 1e-05, %v306_v13 }
  0x1d   : > { %725 = vrsqrt.f32 %v308_v14 }
  0x2a   : > { %v726_v21 = vpop.eup %725 }
  0x2b   : > { %v317_v22 = vrot.slane %v726_v21, %v316_v20 }
  0x2d   : > { %v318_v23 = vcombine.high %v317_v22, %v317_v22 }
  0x2f   : > { %v325_v27 = vrot.slane %v318_v23, %v316_v20 }
  0x31   : > { %v327_v31 = vmul.f32 %v325_v27, %v307_v24 }
  0x33   : > { %v329_v40 = vmul.f32 %v327_v31, %v300_v8  ;;  %v351_v41 = vrot.slane %v327_v31, %v350_v28 }
  0x35   : > { %v330_v43 = vsub.f32 %v328_v35, %v329_v40  ;;  %v353_v44 = vmul.f32 %v663_v32, %v351_v41  ;;  %v354_v45 = vmul.f32 %v664_v33, %v351_v41  ;;  %v355_v46 = vmul.f32 %v667_v34, %v351_v41 }
  0x36   : > { %v356_v47 = vmul.f32 %v668_v36, %v351_v41  ;;  %v357_v48 = vmul.f32 %v671_v37, %v351_v41  ;;  %v358_v49 = vmul.f32 %v672_v38, %v351_v41  ;;  %v359_v50 = vmul.f32 %v675_v39, %v351_v41 }
  0x37   : > { %v365_v51 = vrot.slane %v330_v43, %v350_v28  ;;  %v360_v52 = vmul.f32 %v676_v42, %v351_v41 }
  0x39   : > { %v367_v53 = vadd.f32 %v365_v51, %v353_v44  ;;  %v368_v54 = vadd.f32 %v365_v51, %v354_v45  ;;  %v369_v55 = vadd.f32 %v365_v51, %v355_v46  ;;  %v370_v56 = vadd.f32 %v365_v51, %v356_v47 }
  0x3a   : > { %v371_v57 = vadd.f32 %v365_v51, %v357_v48  ;;  %v372_v58 = vadd.f32 %v365_v51, %v358_v49  ;;  %v373_v59 = vadd.f32 %v365_v51, %v359_v50  ;;  %v374_v60 = vadd.f32 %v365_v51, %v360_v52 }
  0x3b   : > { %v375_v61 = vmax.f32 %v367_v53, 0.0  ;;  %v376_v62 = vmax.f32 %v368_v54, 0.0  ;;  %v377_v63 = vmax.f32 %v369_v55, 0.0  ;;  %v378_v0 = vmax.f32 %v370_v56, 0.0 }
  0x3c   : > { %v379_v1 = vmax.f32 %v371_v57, 0.0  ;;  %v380_v2 = vmax.f32 %v372_v58, 0.0  ;;  %v381_v3 = vmax.f32 %v373_v59, 0.0  ;;  %v382_v4 = vmax.f32 %v374_v60, 0.0 }
  0x3d   : > { %v383_v5 = vpack.c.bf16 %v376_v62, %v375_v61  ;;  %v384_v6 = vpack.c.bf16 %v378_v0, %v377_v63 }
  0x3e   : > { %v385_v7 = vpack.c.bf16 %v380_v2, %v379_v1  ;;  %v386_v8 = vpack.c.bf16 %v382_v4, %v381_v3 }
  0x3f   : > { %687 = vmatprep.mubr.msk.bf16.mxu0 %vm389_vm3, %v383_v5 }
  0x40   : > { %688 = vmatmul.mubr.msk.bf16.vlgmr.msra.gmra.mxu0 %vm389_vm3, %v384_v6  ;;  %691 = vmatprep.mubr.msk.bf16.mxu1 %vm389_vm3, %v385_v7 }
  0x41   : > { %692 = vmatmul.mubr.msk.bf16.vlgmr.msra.gmra.mxu1 %vm389_vm3, %v386_v8 }
 0x100   : > { %v689_v9 = vpop.f32.mrf.mxu0 }
 0x101   : > { %v473_v10 = vpack.c.bf16 %v689_v9, %v689_v9  ;;  %v693_v11 = vpop.f32.mrf.mxu1  ;;  %v512_v21 = vmul.f32 %v689_v9, %v689_v9  ;;  %v492_v31 = vsel %vm488_vm5, %v689_v9, 0.0 }
 0x102   : > { %v440_v12 = vpop.f32.mrf.mxu0  ;;  %v477_v13 = vpack.c.bf16 %v693_v11, %v693_v11  ;;  %v516_v47 = vmul.f32 %v693_v11, %v693_v11  ;;  %v500_v52 = vsel %vm488_vm5, %v693_v11, 0.0  ;;  %v541_v11 = vld [vmem:[%s821_s10] sm:$0x3] }
 0x103   : > { %482 = vst.msk [vmem:[%s846_s25 + $0x8] sm:$0xf] %vm479_vm4, %v473_v10  ;;  %v471_v14 = vpack.c.bf16 %v440_v12, %v440_v12  ;;  %v456_v15 = vpop.f32.mrf.mxu1  ;;  %v510_v18 = vmul.f32 %v440_v12, %v440_v12  ;;  %v489_v24 = vsel %vm488_vm5, %v440_v12, 0.0  ;;  %v521_v37 = vsel %vm488_vm5, %v512_v21, 0.0 }
 0x104   : > { %486 = vst.msk [vmem:[%s846_s25 + $0x18] sm:$0xf] %vm479_vm4, %v477_v13  ;;  %v690_v16 = vpop.f32.mrf.mxu0  ;;  %v475_v17 = vpack.c.bf16 %v456_v15, %v456_v15  ;;  %v514_v39 = vmul.f32 %v456_v15, %v456_v15  ;;  %v496_v43 = vsel %vm488_vm5, %v456_v15, 0.0  ;;  %v529_v57 = vsel %vm488_vm5, %v516_v47, 0.0 }
 0x105   : > { %480 = vst.msk [vmem:[%s846_s25] sm:$0xf] %vm479_vm4, %v471_v14  ;;  %v474_v19 = vpack.c.bf16 %v690_v16, %v690_v16  ;;  %v694_v20 = vpop.f32.mrf.mxu1  ;;  %v518_v32 = vsel %vm488_vm5, %v510_v18, 0.0  ;;  %v513_v33 = vmul.f32 %v690_v16, %v690_v16  ;;  %v494_v38 = vsel %vm488_vm5, %v690_v16, 0.0 }
 0x106   : > { %484 = vst.msk [vmem:[%s846_s25 + $0x10] sm:$0xf] %vm479_vm4, %v475_v17  ;;  %v443_v22 = vpop.f32.mrf.mxu0  ;;  %v478_v23 = vpack.c.bf16 %v694_v20, %v694_v20  ;;  %v525_v48 = vsel %vm488_vm5, %v514_v39, 0.0  ;;  %v517_v53 = vmul.f32 %v694_v20, %v694_v20  ;;  %v502_v58 = vsel %vm488_vm5, %v694_v20, 0.0 }
 0x107   : > { %483 = vst.msk [vmem:[%s846_s25 + $0xc] sm:$0xf] %vm479_vm4, %v474_v19  ;;  %v472_v25 = vpack.c.bf16 %v443_v22, %v443_v22  ;;  %v490_v26 = vsel %vm488_vm5, %v443_v22, 0.0  ;;  %v511_v27 = vmul.f32 %v443_v22, %v443_v22  ;;  %v459_v28 = vpop.f32.mrf.mxu1  ;;  %v523_v42 = vsel %vm488_vm5, %v513_v33, 0.0 }
 0x108   : > { %v491_v29 = vadd.f32 %v490_v26, %v489_v24  ;;  %487 = vst.msk [vmem:[%s846_s25 + $0x1c] sm:$0xf] %vm479_vm4, %v478_v23  ;;  %v476_v30 = vpack.c.bf16 %v459_v28, %v459_v28  ;;  %v515_v44 = vmul.f32 %v459_v28, %v459_v28  ;;  %v498_v49 = vsel %vm488_vm5, %v459_v28, 0.0 }
 0x109   : > { %481 = vst.msk [vmem:[%s846_s25 + $0x4] sm:$0xf] %vm479_vm4, %v472_v25  ;;  %v519_v34 = vsel %vm488_vm5, %v511_v27, 0.0  ;;  %v531_v61 = vsel %vm488_vm5, %v517_v53, 0.0 }
 0x10a   : > { %v493_v35 = vadd.f32 %v492_v31, %v491_v29  ;;  %v520_v36 = vadd.f32 %v519_v34, %v518_v32  ;;  %485 = vst.msk [vmem:[%s846_s25 + $0x14] sm:$0xf] %vm479_vm4, %v476_v30  ;;  %v527_v54 = vsel %vm488_vm5, %v515_v44, 0.0 }
 0x10c   : > { %v522_v40 = vadd.f32 %v521_v37, %v520_v36  ;;  %v495_v41 = vadd.f32 %v494_v38, %v493_v35 }
 0x10e   : > { %v497_v45 = vadd.f32 %v496_v43, %v495_v41  ;;  %v524_v46 = vadd.f32 %v523_v42, %v522_v40 }
 0x110   : > { %v499_v50 = vadd.f32 %v498_v49, %v497_v45  ;;  %v526_v51 = vadd.f32 %v525_v48, %v524_v46 }
 0x112   : > { %v501_v55 = vadd.f32 %v500_v52, %v499_v50  ;;  %v528_v56 = vadd.f32 %v527_v54, %v526_v51 }
 0x114   : > { %v503_v59 = vadd.f32 %v502_v58, %v501_v55  ;;  %v530_v60 = vadd.f32 %v529_v57, %v528_v56 }
 0x116   : > { %v504_v62 = vrot.slane %v503_v59, 4  ;;  %v532_v63 = vadd.f32 %v531_v61, %v530_v60 }
 0x118   : > { %v505_v0 = vadd.f32 %v504_v62, %v503_v59  ;;  %v533_v1 = vrot.slane %v532_v63, 4 }
 0x11a   : > { %v506_v2 = vrot.slane %v505_v0, 2  ;;  %v534_v3 = vadd.f32 %v533_v1, %v532_v63 }
 0x11c   : > { %v507_v4 = vadd.f32 %v506_v2, %v505_v0  ;;  %v535_v5 = vrot.slane %v534_v3, 2 }
 0x11e   : > { %v508_v6 = vrot.slane %v507_v4, 1  ;;  %v536_v7 = vadd.f32 %v535_v5, %v534_v3 }
 0x120   : > { %v537_v8 = vrot.slane %v536_v7, 1  ;;  %v509_v9 = vadd.f32 %v508_v6, %v507_v4 }
 0x122   : > { %v538_v10 = vadd.f32 %v537_v8, %v536_v7 }
 0x124   : > { %v540_v12 = vsel %vm539_vm6, %v509_v9, %v538_v10 }
 0x125   : > { %v542_v13 = vadd.f32 %v541_v11, %v540_v12 }
 0x127   : > { %544 = vst.msk [vmem:[%s821_s10] sm:$0x3] %vm292_vm2, %v542_v13 }
 0x128 PF: > { %s17_s23 = sadd.s32 1, %s749_s23   ;;  %s899_s21 = smov %s745_s22 }
 0x129   : > { %p14_p5 = scmp.ge.s32.totalorder %s17_s23, 4   ;;  %s900_s22 = smov %s902_s24 }
 0x12b   :  { %16 = sbr.rel (!%p14_p5) target bundleno = 2 (0x2), region = 86 }

// kernel: bottleneck_pallas.4
= control target key start
LH: loop header
LB: loop body
LE: loop exit
PB: predicated region body
PF: predicated region fallthrough
CT: control target
= control target key end

     0   :  { %9 = vsyncpa [#allocation3], 0  ;;  %s870_s0 = inlined_call_operand.hbm [shape: f32[2,8,8,32], index: 0, kind: input, shape index: {}]   ;;  %s871_s1 = inlined_call_operand.vmem [shape: f32[32,8], index: 1, kind: input, shape index: {}]   ;;  %s872_s2 = inlined_call_operand.vmem [shape: bf16[2,8,8,8], index: 2, kind: output, shape index: {0}]   ;;  %s873_s3 = inlined_call_operand.vmem [shape: f32[2,2,8], index: 3, kind: output, shape index: {1}]  }
   0x1   :  { %11 = vsyncpa [#allocation3 + $0x1], 0  ;;  %s714_s12 = smov 0   ;;  %s716_s13 = smov 0  }
   0x2   :  { %s718_s14 = smov 0   ;;  %s720_s15 = smov 0  }
   0x3   :  { %s722_s16 = smov 0   ;;  %s724_s17 = smov 0  }
   0x4 LB: > { %s510_s18 = sadd.s32 4294967295, %s688_s17   ;;  %s29_s19 = sadd.s32 1, %s684_s16  ;;  %s688_s17 = sphi %s724_s17, %s17_s17   ;;  %s684_s16 = sphi %s722_s16, %s881_s16   ;;  %s680_s15 = sphi %s720_s15, %s880_s15   ;;  %s676_s14 = sphi %s718_s14, %s879_s14   ;;  %s672_s13 = sphi %s716_s13, %s878_s13   ;;  %s668_s12 = sphi %s714_s12, %s877_s12  }
   0x5   : > { %p31_p0 = scmp.ge.s32.totalorder %s29_s19, 2  ;;  %s38_s20 = sadd.s32 1, %s676_s14 }
   0x6   : > { %p45_p1 = scmp.ne.s32.totalorder %s676_s14, %s672_s13  ;;  %p46_p2 = scmp.eq.s32.totalorder %s688_s17, 0 }
   0x7   : > { %s883_s19 = smov (%p31_p0, %s29_s19), 0  ;;  %p51_p4 = scmp.ne.s32.totalorder %s672_s13, %s668_s12 }
   0x8   : > { %p750_p3 = por %p46_p2, %p45_p1  ;;  %s35_s22 = ssub.s32 %s684_s16, %s883_s19 }
   0x9   : > { %p52_p5 = scmp.eq.s32.totalorder %s510_s18, 0  ;;  %p36_p6 = scmp.eq.s32.totalorder %s35_s22, 0 }
   0xa   : > { %p558_p8 = scmp.lt.s32.totalorder %s688_s17, 2  ;;  %s153_s25 = sand.u32 1, %s676_s14  }
   0xb   : > { %p757_p7 = por %p52_p5, %p51_p4  ;;  %s528_s26 = sshll.u32 %s684_s16, 10 }
   0xc   : > { %s763_s24 = scalar_select %p36_p6, %s676_s14, %s38_s20  }
   0xd   : > { %s514_s27 = sshll.u32 %s153_s25, 6  ;;  %s164_s30 = scalar_lea.hbm %s870_s0, %s528_s26 }
   0xe   : > { %s157_s4 = scalar_lea.vmem [#allocation2], %s514_s27  ;;  %p772_p9 = pnand %p558_p8, %p750_p3 }
   0xf   : > { %s165_s5 = sshll.u32 %s157_s4, 4  ;;  %s154_s7 = scalar_lea.sflag [#allocation3], %s153_s25  ;;  %s166_s5 = int_to_ptr.vmem [resolvable:$true] %s165_s5 }
  0x10   : > { %p612_p10 = pneg %p772_p9  ;;  %s623_s8 = scalar_lea.vmem %s166_s5, 1024 }
  0x11   : > { %p624_p11 = scmp.ne.s32.totalorder %s166_s5, %s623_s8  ;;  %s690_s9 = smov [#allocation2]  }
  0x12   : > { %s628_s10 = sshll.u32 %s690_s9, 4  ;;  %s629_s10 = int_to_ptr.vmem [resolvable:$false] %s628_s10 }
  0x13   : > { %p626_p12 = pnand %p624_p11, %p612_p10  ;;  %s630_s11 = scalar_lea.vmem %s629_s10, 2048 }
  0x14   : > { %p631_p0 = scmp.lt.s32.totalorder %s166_s5, %s629_s10  ;;  %p632_p1 = scmp.lt.s32.totalorder %s630_s11, %s623_s8 }
  0x15   : > { %p627_p13 = pneg %p626_p12 }
  0x16   : > { %p633_p2 = por %p632_p1, %p631_p0 }
  0x18   : > { %p634_p3 = pnand %p633_p2, %p627_p13 }
  0x1a   : > { %637 = shalt.err (!%p634_p3)
}
  0x1b   : > { %s691_s12 = smov 128   ;;  %s692_s18 = smov 8  }
  0x1c   : > { %557 = dma.hbm_to_vmem [thread:$0]  (!%p772_p9), %s164_s30, 1024, %s166_s5, %s154_s7, %s691_s12, %s691_s12, %s692_s18  }
  0x1d   : > { %p517_p4 = scmp.ge.s32.totalorder %s688_s17, 1  ;;  %p173_p5 = scmp.lt.s32.totalorder %s688_s17, 3 }
  0x1f   : > { %p174_p6 = pnand %p517_p4, %p173_p5 }
  0x20   : > { %s179_s20 = sand.u32 (!%p174_p6), 1, %s672_s13  }
  0x21   : > { %177 = sbr.rel (%p174_p6) target bundleno = 282 (0x11a), region = 28  ;;  %s518_s21 = sshll.u32 (!%p174_p6), %s179_s20, 6 }
  0x22   : > { %s180_s22 = scalar_lea.sflag (!%p174_p6), [#allocation3], %s179_s20  ;;  %s183_s25 = scalar_lea.vmem (!%p174_p6), [#allocation2], %s518_s21 }
  0x26   : > { %663 = dma.done.wait (%p757_p7), %s180_s22, 1024  }
  0x27   : > { %665 = vsyncadd (%p757_p7), %s180_s22, 4294966272  ;;  %v244_v0 = vld [vmem:[%s871_s1 + $0x10] sm:$0xff]  ;;  %v245_v1 = vld [vmem:[%s871_s1 + $0x18] sm:$0xff]  ;;  %vm248_vm0 = vcmask 261120   ;;  %p213_p7 = scmp.lt.s32.totalorder %s680_s15, 1  ;;  %vm228_vm1 = vcmask 58368  }
  0x28   : > { %v242_v2 = vld [vmem:[%s871_s1] sm:$0xff]  ;;  %v247_v3 = vpack.c.bf16 %v245_v1, %v244_v0  ;;  %v243_v4 = vld [vmem:[%s871_s1 + $0x8] sm:$0xff]  ;;  %v232_v10 = vld [vmem:[%s183_s25 + $0x10] sm:$0xff]  ;;  %v693_v18 = vmov 0.0   ;;  %vm334_vm2 = vcmask 60416   ;;  %vm343_vm3 = vcmask 64512  }
  0x29   : > { %v230_v5 = vld [vmem:[%s183_s25] sm:$0xff]  ;;  %v231_v6 = vld [vmem:[%s183_s25 + $0x8] sm:$0xff]  ;;  %v246_v7 = vpack.c.bf16 %v243_v4, %v242_v2  ;;  %v233_v12 = vld [vmem:[%s183_s25 + $0x18] sm:$0xff]  ;;  %s885_s15 = smov (!%p213_p7, %s680_s15), 1  ;;  %vm394_vm4 = vcmask 1040384  }
  0x2a   : > { %v238_v8 = vpack.c.bf16 %v231_v6, %v230_v5  ;;  %v234_v9 = vld [vmem:[%s183_s25 + $0x20] sm:$0xff]  ;;  %536 = vmatprep.subr.bf16.mxu0 %v247_v3  ;;  %548 = vmatprep.subr.bf16.mxu1 %v247_v3  ;;  %v235_v11 = vld [vmem:[%s183_s25 + $0x28] sm:$0xff]  ;;  %v236_v14 = vld [vmem:[%s183_s25 + $0x30] sm:$0xff]  ;;  %v239_v16 = vpack.c.bf16 %v233_v12, %v232_v10  ;;  %s521_s23 = sshll.u32 %s885_s15, 1  ;;  %s529_s10 = sshll.u32 %s885_s15, 5 }
  0x2b   : > { %537 = vmatpush3.bf16.msra.mxu0 %v247_v3  ;;  %550 = vmatpush3.bf16.msra.mxu1 %v247_v3  ;;  %v240_v13 = vpack.c.bf16 %v235_v11, %v234_v9  ;;  %v237_v15 = vld [vmem:[%s183_s25 + $0x38] sm:$0xff]  ;;  %s808_s9 = scalar_lea.vmem %s873_s3, %s521_s23  ;;  %s815_s18 = scalar_lea.vmem %s872_s2, %s529_s10 }
  0x2c   : > { %538 = vmatprep.subr.bf16.mxu0 %v246_v7  ;;  %549 = vmatprep.subr.bf16.mxu1 %v246_v7  ;;  %v241_v17 = vpack.c.bf16 %v237_v15, %v236_v14  ;;  %229 = vst.msk [vmem:[%s808_s9] sm:$0x3] %vm228_vm1, %v693_v18 }
  0x2d   : > { %540 = vmatprep.mubr.msk.bf16.mxu0 %vm248_vm0, %v238_v8  ;;  %544 = vmatprep.mubr.msk.bf16.mxu1 %vm248_vm0, %v240_v13 }
  0x2f   : > { %539 = vmatpush3.bf16.msra.mxu0 %v246_v7  ;;  %551 = vmatpush3.bf16.msra.mxu1 %v246_v7 }
  0x32   : > { %541 = vmatmul.mubr.msk.bf16.vlgmr.msra.gmra.mxu0 %vm248_vm0, %v239_v16  ;;  %545 = vmatmul.mubr.msk.bf16.vlgmr.msra.gmra.mxu1 %vm248_vm0, %v241_v17 }
  0xf2   : > { %v542_v19 = vpop.f32.mrf.mxu0  ;;  %v546_v20 = vpop.f32.mrf.mxu1 }
  0xf3   : > { %v328_v21 = vpack.c.bf16 %v542_v19, %v542_v19  ;;  %v332_v22 = vpack.c.bf16 %v546_v20, %v546_v20  ;;  %v367_v31 = vmul.f32 %v542_v19, %v542_v19  ;;  %v347_v41 = vsel %vm343_vm3, %v542_v19, 0.0 }
  0xf4   : > { %v295_v23 = vpop.f32.mrf.mxu0  ;;  %v311_v24 = vpop.f32.mrf.mxu1  ;;  %v371_v57 = vmul.f32 %v546_v20, %v546_v20  ;;  %v355_v62 = vsel %vm343_vm3, %v546_v20, 0.0 }
  0xf5   : > { %337 = vst.msk [vmem:[%s815_s18 + $0x8] sm:$0xf] %vm334_vm2, %v328_v21  ;;  %v326_v25 = vpack.c.bf16 %v295_v23, %v295_v23  ;;  %341 = vst.msk [vmem:[%s815_s18 + $0x18] sm:$0xf] %vm334_vm2, %v332_v22  ;;  %v330_v27 = vpack.c.bf16 %v311_v24, %v311_v24  ;;  %v365_v29 = vmul.f32 %v295_v23, %v295_v23  ;;  %v344_v35 = vsel %vm343_vm3, %v295_v23, 0.0 }
  0xf6   : > { %v543_v26 = vpop.f32.mrf.mxu0  ;;  %v547_v28 = vpop.f32.mrf.mxu1  ;;  %v376_v47 = vsel %vm343_vm3, %v367_v31, 0.0  ;;  %v369_v49 = vmul.f32 %v311_v24, %v311_v24  ;;  %v351_v53 = vsel %vm343_vm3, %v311_v24, 0.0  ;;  %v384_v3 = vsel %vm343_vm3, %v371_v57, 0.0  ;;  %v396_v21 = vld [vmem:[%s808_s9] sm:$0x3] }
  0xf7   : > { %335 = vst.msk [vmem:[%s815_s18] sm:$0xf] %vm334_vm2, %v326_v25  ;;  %v329_v30 = vpack.c.bf16 %v543_v26, %v543_v26  ;;  %339 = vst.msk [vmem:[%s815_s18 + $0x10] sm:$0xf] %vm334_vm2, %v330_v27  ;;  %v333_v33 = vpack.c.bf16 %v547_v28, %v547_v28  ;;  %v373_v42 = vsel %vm343_vm3, %v365_v29, 0.0  ;;  %v368_v43 = vmul.f32 %v543_v26, %v543_v26 }
  0xf8   : > { %v298_v32 = vpop.f32.mrf.mxu0  ;;  %v314_v34 = vpop.f32.mrf.mxu1  ;;  %v349_v48 = vsel %vm343_vm3, %v543_v26, 0.0  ;;  %v380_v58 = vsel %vm343_vm3, %v369_v49, 0.0  ;;  %v372_v63 = vmul.f32 %v547_v28, %v547_v28  ;;  %v357_v4 = vsel %vm343_vm3, %v547_v28, 0.0 }
  0xf9   : > { %338 = vst.msk [vmem:[%s815_s18 + $0xc] sm:$0xf] %vm334_vm2, %v329_v30  ;;  %v327_v36 = vpack.c.bf16 %v298_v32, %v298_v32  ;;  %v345_v37 = vsel %vm343_vm3, %v298_v32, 0.0  ;;  %v366_v38 = vmul.f32 %v298_v32, %v298_v32  ;;  %342 = vst.msk [vmem:[%s815_s18 + $0x1c] sm:$0xf] %vm334_vm2, %v333_v33  ;;  %v331_v40 = vpack.c.bf16 %v314_v34, %v314_v34 }
  0xfa   : > { %v346_v39 = vadd.f32 %v345_v37, %v344_v35  ;;  %v378_v52 = vsel %vm343_vm3, %v368_v43, 0.0  ;;  %v370_v54 = vmul.f32 %v314_v34, %v314_v34  ;;  %v353_v59 = vsel %vm343_vm3, %v314_v34, 0.0 }
  0xfb   : > { %336 = vst.msk [vmem:[%s815_s18 + $0x4] sm:$0xf] %vm334_vm2, %v327_v36  ;;  %v374_v44 = vsel %vm343_vm3, %v366_v38, 0.0  ;;  %340 = vst.msk [vmem:[%s815_s18 + $0x14] sm:$0xf] %vm334_vm2, %v331_v40  ;;  %v386_v7 = vsel %vm343_vm3, %v372_v63, 0.0 }
  0xfc   : > { %v348_v45 = vadd.f32 %v347_v41, %v346_v39  ;;  %v375_v46 = vadd.f32 %v374_v44, %v373_v42  ;;  %v382_v0 = vsel %vm343_vm3, %v370_v54, 0.0 }
  0xfe   : > { %v377_v50 = vadd.f32 %v376_v47, %v375_v46  ;;  %v350_v51 = vadd.f32 %v349_v48, %v348_v45 }
 0x100   : > { %v352_v55 = vadd.f32 %v351_v53, %v350_v51  ;;  %v379_v56 = vadd.f32 %v378_v52, %v377_v50 }
 0x102   : > { %v354_v60 = vadd.f32 %v353_v59, %v352_v55  ;;  %v381_v61 = vadd.f32 %v380_v58, %v379_v56 }
 0x104   : > { %v356_v1 = vadd.f32 %v355_v62, %v354_v60  ;;  %v383_v2 = vadd.f32 %v382_v0, %v381_v61 }
 0x106   : > { %v358_v5 = vadd.f32 %v357_v4, %v356_v1  ;;  %v385_v6 = vadd.f32 %v384_v3, %v383_v2 }
 0x108   : > { %v359_v8 = vrot.slane %v358_v5, 4  ;;  %v387_v9 = vadd.f32 %v386_v7, %v385_v6 }
 0x10a   : > { %v360_v10 = vadd.f32 %v359_v8, %v358_v5  ;;  %v388_v11 = vrot.slane %v387_v9, 4 }
 0x10c   : > { %v361_v12 = vrot.slane %v360_v10, 2  ;;  %v389_v13 = vadd.f32 %v388_v11, %v387_v9 }
 0x10e   : > { %v362_v14 = vadd.f32 %v361_v12, %v360_v10  ;;  %v390_v15 = vrot.slane %v389_v13, 2 }
 0x110   : > { %v363_v16 = vrot.slane %v362_v14, 1  ;;  %v391_v17 = vadd.f32 %v390_v15, %v389_v13 }
 0x112   : > { %v392_v18 = vrot.slane %v391_v17, 1  ;;  %v364_v19 = vadd.f32 %v363_v16, %v362_v14 }
 0x114   : > { %v393_v20 = vadd.f32 %v392_v18, %v391_v17 }
 0x116   : > { %v395_v22 = vsel %vm394_vm4, %v364_v19, %v393_v20 }
 0x117   : > { %v397_v23 = vadd.f32 %v396_v21, %v395_v22 }
 0x119   : > { %399 = vst.msk [vmem:[%s808_s9] sm:$0x3] %vm228_vm1, %v397_v23 }
 0x11a PF: > { %s17_s17 = sadd.s32 1, %s688_s17   ;;  %s877_s12 = smov %s672_s13 }
 0x11b   : > { %p14_p8 = scmp.ge.s32.totalorder %s17_s17, 4   ;;  %s878_s13 = smov %s676_s14 }
 0x11c   : > { %s879_s14 = smov %s763_s24  ;;  %s880_s15 = smov %s684_s16 }
 0x11d   : > { %s881_s16 = smov %s883_s19  ;;  %16 = sbr.rel (!%p14_p8) target bundleno = 4 (0x4), region = 84 }
 0x122   :  { %438 = vsyncpa [#allocation3], 1 }
 0x123   :  { %440 = vsyncpa [#allocation3 + $0x1], 1 }

// kernel: bottleneck_pallas.7
= control target key start
LH: loop header
LB: loop body
LE: loop exit
PB: predicated region body
PF: predicated region fallthrough
CT: control target
= control target key end

     0   :  { %10 = vsyncpa [#allocation3], 0  ;;  %s765_s0 = inlined_call_operand.vmem [shape: bf16[2,8,8,32], index: 0, kind: input, shape index: {}]   ;;  %s766_s1 = inlined_call_operand.vmem [shape: f32[2,2,32], index: 1, kind: input, shape index: {}]   ;;  %s767_s2 = inlined_call_operand.vmem [shape: f32[1,32], index: 2, kind: input, shape index: {}]   ;;  %s768_s3 = inlined_call_operand.vmem [shape: f32[1,32], index: 3, kind: input, shape index: {}]   ;;  %s769_s4 = inlined_call_operand.vmem [shape: f32[2,8,8,32], index: 4, kind: input, shape index: {}]   ;;  %s770_s5 = inlined_call_operand.hbm [shape: f32[2,8,8,32], index: 5, kind: output, shape index: {}]  }
   0x1   :  { %12 = vsyncpa [#allocation3 + $0x1], 0  ;;  %s621_s18 = smov 0   ;;  %s623_s19 = smov 0  }
   0x2   :  { %s625_s20 = smov 0   ;;  %s627_s21 = smov 0  }
   0x3 LB: > { %s642_s22 = sadd.s32 4294967295, %s585_s21   ;;  %s445_s23 = sadd.s32 4294967294, %s585_s21   ;;  %s585_s21 = sphi %s627_s21, %s776_s21   ;;  %s581_s20 = sphi %s625_s20, %s775_s20   ;;  %s577_s19 = sphi %s623_s19, %s774_s19   ;;  %s573_s18 = sphi %s621_s18, %s773_s18  }
   0x4   : > { %s646_s24 = sadd.s32 1, %s585_s21   ;;  %s140_s25 = sadd.s32 1, %s581_s20 }
   0x5   : > { %s137_s26 = ssub.s32 %s585_s21, %s646_s24  ;;  %p150_p0 = scmp.ne.s32.totalorder %s581_s20, %s577_s19 }
   0x6   : > { %p138_p1 = scmp.eq.s32.totalorder %s137_s26, 0  ;;  %p151_p2 = scmp.eq.s32.totalorder %s642_s22, 1 }
   0x7   : > { %p156_p3 = scmp.ne.s32.totalorder %s577_s19, %s573_s18  ;;  %p157_p4 = scmp.eq.s32.totalorder %s445_s23, 1 }
   0x8   : > { %s657_s27 = scalar_select %p138_p1, %s581_s20, %s140_s25  }
   0x9   : > { %p659_p5 = por %p151_p2, %p150_p0  ;;  %p663_p6 = por %p157_p4, %p156_p3 }
   0xa   : > { %p448_p7 = scmp.ge.s32.totalorder %s585_s21, 1  ;;  %p200_p8 = scmp.lt.s32.totalorder %s585_s21, 3 }
   0xc   : > { %p201_p9 = pnand %p448_p7, %p200_p8 }
   0xd   : > { %p233_p10 = scmp.lt.s32.totalorder (!%p201_p9), %s642_s22, 1  ;;  %s230_s16 = sand.u32 (!%p201_p9), 1, %s577_s19  }
   0xe   : > { %204 = sbr.rel (%p201_p9) target bundleno = 86 (0x56), region = 40  ;;  %s449_s26 = sshll.u32 (!%p201_p9), %s230_s16, 6 }
   0xf   : > { %s696_s8 = scalar_lea.vmem (!%p201_p9), [#allocation2], %s449_s26  ;;  %s588_s15 = smov (!%p201_p9), [#allocation2]  }
  0x13   : > { %v243_v0 = vld [vmem:[%s766_s1] sm:$0x3]  ;;  %v244_v1 = vld [vmem:[%s766_s1 + $0x2] sm:$0x3]  ;;  %vm245_vm0 = vcmask 254976   ;;  %v263_v13 = vlaneseq  ;;  %s677_s9 = scalar_select %p233_p10, %s642_s22, 1 }
  0x14   : > { %v246_v2 = vsel %vm245_vm0, %v243_v0, 0.0  ;;  %v247_v3 = vsel %vm245_vm0, %v244_v1, 0.0  ;;  %v587_v11 = vmov 1966171168   ;;  %v256_v20 = vld [vmem:[%s767_s2] sm:$0x1] }
  0x15   : > { %v248_v4 = vadd.f32 %v247_v3, %v246_v2  ;;  %v261_v12 = vunpack.c.l.s4 %v587_v11  ;;  %v264_v15 = vshrl.u32 %v263_v13, 7  ;;  %s459_s10 = sshll.u32 %s677_s9, 5  ;;  %s460_s17 = sshll.u32 %s677_s9, 6  ;;  %v277_v31 = vld [vmem:[%s768_s3] sm:$0x1]  ;;  %vm348_vm1 = vcmask 261120  }
  0x16   : > { %s237_s13 = scalar_lea.vmem %s765_s0, %s459_s10  ;;  %s242_s7 = scalar_lea.vmem %s769_s4, %s460_s17 }
  0x17   : > { %v249_v5 = vmul.f32 0.0078125, %v248_v4  ;;  %v262_v14 = vunpack.c.0.s8 %v261_v12  ;;  %v463_v21 = vld [vmem:[%s237_s13] sm:$0xff]   ;;  %v478_v22 = vld [vmem:[%s237_s13 + $0x8] sm:$0xff]   ;;  %v307_v24 = vsub.s32 0, %v264_v15  ;;  %v479_v25 = vld [vmem:[%s237_s13 + $0x10] sm:$0xff]   ;;  %s371_s9 = sshll.u32 %s696_s8, 4  ;;  %s700_s9 = int_to_ptr.vmem [resolvable:$true] %s371_s9 }
  0x18   : > { %v480_v26 = vld [vmem:[%s237_s13 + $0x18] sm:$0xff]   ;;  %v464_v28 = vunpack.c.l.bf16 %v463_v21  ;;  %v465_v29 = vunpack.c.h.bf16 %v463_v21  ;;  %v468_v30 = vunpack.c.l.bf16 %v478_v22  ;;  %v469_v32 = vunpack.c.h.bf16 %v478_v22  ;;  %v296_v47 = vld [vmem:[%s242_s7] sm:$0xff]  ;;  %v297_v49 = vld [vmem:[%s242_s7 + $0x8] sm:$0xff]  ;;  %s461_s10 = sshll.u32 %s642_s22, 10  ;;  %s725_s13 = scalar_lea.sflag [#allocation3], %s230_s16 }
  0x19   : > { %v250_v6 = vmul.f32 %v249_v5, %v249_v5  ;;  %v265_v16 = vsub.s32 %v262_v14, %v264_v15  ;;  %v472_v33 = vunpack.c.l.bf16 %v479_v25  ;;  %v473_v34 = vunpack.c.h.bf16 %v479_v25  ;;  %v298_v51 = vld [vmem:[%s242_s7 + $0x10] sm:$0xff]  ;;  %v299_v52 = vld [vmem:[%s242_s7 + $0x18] sm:$0xff]  ;;  %v300_v53 = vld [vmem:[%s242_s7 + $0x20] sm:$0xff]  ;;  %s705_s12 = scalar_lea.hbm %s770_s5, %s461_s10  ;;  %s525_s14 = scalar_lea.vmem %s700_s9, 1024 }
  0x1a   : > { %v476_v35 = vunpack.c.l.bf16 %v480_v26  ;;  %v477_v38 = vunpack.c.h.bf16 %v480_v26  ;;  %v301_v58 = vld [vmem:[%s242_s7 + $0x28] sm:$0xff]  ;;  %v302_v59 = vld [vmem:[%s242_s7 + $0x30] sm:$0xff]  ;;  %v303_v60 = vld [vmem:[%s242_s7 + $0x38] sm:$0xff]  ;;  %p526_p11 = scmp.ne.s32.totalorder %s700_s9, %s525_s14  ;;  %s529_s17 = sshll.u32 %s588_s15, 4  ;;  %s530_s17 = int_to_ptr.vmem [resolvable:$false] %s529_s17 }
  0x1b   : > { %v252_v7 = vrot.slane %v250_v6, 7  ;;  %s531_s23 = scalar_lea.vmem %s530_s17, 2048  ;;  %p532_p0 = scmp.lt.s32.totalorder %s700_s9, %s530_s17 }
  0x1c   : > { %p527_p12 = pnand %p526_p11, %p659_p5  ;;  %p533_p1 = scmp.lt.s32.totalorder %s531_s23, %s525_s14 }
  0x1d   : > { %v254_v8 = vsub.f32 %v249_v5, %v252_v7 }
  0x1e   : > { %p528_p13 = pneg %p527_p12  ;;  %p534_p2 = por %p533_p1, %p532_p0 }
  0x1f   : > { %v255_v9 = vmax.f32 %v254_v8, 0.0 }
  0x20   : > { %p535_p3 = pnand %p534_p2, %p528_p13 }
  0x21   : > { %v257_v10 = vadd.f32 1e-05, %v255_v9 }
  0x23   : > { %523 = vrsqrt.f32 %v257_v10 }
  0x30   : > { %v524_v17 = vpop.eup %523 }
  0x31   : > { %v266_v18 = vrot.slane %v524_v17, %v265_v16 }
  0x33   : > { %v267_v19 = vcombine.high %v266_v18, %v266_v18 }
  0x35   : > { %v274_v23 = vrot.slane %v267_v19, %v265_v16 }
  0x37   : > { %v276_v27 = vmul.f32 %v274_v23, %v256_v20 }
  0x39   : > { %v278_v36 = vmul.f32 %v276_v27, %v249_v5  ;;  %v308_v37 = vrot.slane %v276_v27, %v307_v24 }
  0x3b   : > { %v279_v39 = vsub.f32 %v277_v31, %v278_v36  ;;  %v310_v40 = vmul.f32 %v464_v28, %v308_v37  ;;  %v311_v41 = vmul.f32 %v465_v29, %v308_v37  ;;  %v312_v42 = vmul.f32 %v468_v30, %v308_v37 }
  0x3c   : > { %v313_v43 = vmul.f32 %v469_v32, %v308_v37  ;;  %v314_v44 = vmul.f32 %v472_v33, %v308_v37  ;;  %v315_v45 = vmul.f32 %v473_v34, %v308_v37  ;;  %v316_v46 = vmul.f32 %v476_v35, %v308_v37 }
  0x3d   : > { %v322_v48 = vrot.slane %v279_v39, %v307_v24  ;;  %v317_v50 = vmul.f32 %v477_v38, %v308_v37 }
  0x3f   : > { %v324_v54 = vadd.f32 %v322_v48, %v310_v40  ;;  %v325_v55 = vadd.f32 %v322_v48, %v311_v41  ;;  %v326_v56 = vadd.f32 %v322_v48, %v312_v42  ;;  %v327_v57 = vadd.f32 %v322_v48, %v313_v43 }
  0x40   : > { %v328_v61 = vadd.f32 %v322_v48, %v314_v44  ;;  %v329_v62 = vadd.f32 %v322_v48, %v315_v45  ;;  %v330_v63 = vadd.f32 %v322_v48, %v316_v46  ;;  %v331_v0 = vadd.f32 %v322_v48, %v317_v50 }
  0x41   : > { %v332_v1 = vadd.f32 %v324_v54, %v296_v47  ;;  %v333_v2 = vadd.f32 %v325_v55, %v297_v49  ;;  %v334_v3 = vadd.f32 %v326_v56, %v298_v51  ;;  %v335_v4 = vadd.f32 %v327_v57, %v299_v52 }
  0x42   : > { %v336_v5 = vadd.f32 %v328_v61, %v300_v53  ;;  %v337_v6 = vadd.f32 %v329_v62, %v301_v58  ;;  %v338_v7 = vadd.f32 %v330_v63, %v302_v59  ;;  %v339_v8 = vadd.f32 %v331_v0, %v303_v60 }
  0x43   : > { %v340_v9 = vmax.f32 %v332_v1, 0.0  ;;  %v341_v10 = vmax.f32 %v333_v2, 0.0  ;;  %v342_v11 = vmax.f32 %v334_v3, 0.0  ;;  %v343_v12 = vmax.f32 %v335_v4, 0.0 }
  0x44   : > { %v344_v13 = vmax.f32 %v336_v5, 0.0  ;;  %v345_v14 = vmax.f32 %v337_v6, 0.0  ;;  %v346_v15 = vmax.f32 %v338_v7, 0.0  ;;  %v347_v16 = vmax.f32 %v339_v8, 0.0 }
  0x45   : > { %349 = vst.msk [vmem:[%s696_s8] sm:$0xff] %vm348_vm1, %v340_v9  ;;  %350 = vst.msk [vmem:[%s696_s8 + $0x8] sm:$0xff] %vm348_vm1, %v341_v10 }
  0x46   : > { %351 = vst.msk [vmem:[%s696_s8 + $0x10] sm:$0xff] %vm348_vm1, %v342_v11  ;;  %352 = vst.msk [vmem:[%s696_s8 + $0x18] sm:$0xff] %vm348_vm1, %v343_v12 }
  0x47   : > { %353 = vst.msk [vmem:[%s696_s8 + $0x20] sm:$0xff] %vm348_vm1, %v344_v13  ;;  %354 = vst.msk [vmem:[%s696_s8 + $0x28] sm:$0xff] %vm348_vm1, %v345_v14 }
  0x48   : > { %355 = vst.msk [vmem:[%s696_s8 + $0x30] sm:$0xff] %vm348_vm1, %v346_v15  ;;  %356 = vst.msk [vmem:[%s696_s8 + $0x38] sm:$0xff] %vm348_vm1, %v347_v16 }
  0x49   : > { %538 = shalt.err (!%p535_p3)
}
  0x4a   : > { %s539_s16 = scalar_lea.hbm %s705_s12, 1024  ;;  %s543_s30 = scalar_lea.hbm %s770_s5, 2048 }
  0x4b   : > { %p540_p4 = scmp.ne.s32.totalorder %s705_s12, %s539_s16  ;;  %p544_p9 = scmp.lt.s32.totalorder %s705_s12, %s770_s5 }
  0x4c   : > { %p545_p10 = scmp.lt.s32.totalorder %s543_s30, %s539_s16 }
  0x4d   : > { %p541_p7 = pnand %p540_p4, %p659_p5 }
  0x4e   : > { %p546_p11 = por %p545_p10, %p544_p9 }
  0x4f   : > { %p542_p8 = pneg %p541_p7 }
  0x51   : > { %p547_p12 = pnand %p546_p11, %p542_p8 }
  0x53   : > { %550 = shalt.err (!%p547_p12)
}
  0x54   : > { %s589_s8 = smov 128   ;;  %s590_s10 = smov 8  }
  0x55   : > { %481 = dma.vmem_to_hbm [thread:$0]  (%p659_p5), %s700_s9, 1024, %s705_s12, %s725_s13, %s589_s8, %s589_s8, %s590_s10  }
  0x56 PF: > { %p487_p13 = scmp.ge.s32.totalorder %s585_s21, 2  ;;  %s386_s22 = sand.u32 1, %s573_s18  }
  0x57   : > { %s387_s11 = scalar_lea.sflag [#allocation3], %s386_s22 }
  0x58   : > { %p484_p0 = pnand %p487_p13, %p663_p6 }
  0x5a   : > { %p485_p1 = pneg %p484_p0 }
  0x5c   : > { %568 = dma.done.wait (%p485_p1), %s387_s11, 1024  }
  0x5d   : > { %570 = vsyncadd (%p485_p1), %s387_s11, 4294966272  ;;  %p15_p2 = scmp.ge.s32.totalorder %s646_s24, 4   ;;  %s773_s18 = smov %s577_s19 }
  0x5e   : > { %s774_s19 = smov %s581_s20  ;;  %s775_s20 = smov %s657_s27 }
  0x5f   : > { %s776_s21 = smov %s646_s24  ;;  %17 = sbr.rel (!%p15_p2) target bundleno = 3 (0x3), region = 78 }
  0x64   :  { %392 = vsyncpa [#allocation3], 1 }
  0x65   :  { %394 = vsyncpa [#allocation3 + $0x1], 1 }

// kernel: bottleneck_pallas.5
= control target key start
LH: loop header
LB: loop body
LE: loop exit
PB: predicated region body
PF: predicated region fallthrough
CT: control target
= control target key end

     0   :  { %s1734_s21 = smov 0   ;;  %s1736_s22 = smov 0   ;;  %s2071_s0 = inlined_call_operand.vmem [shape: bf16[2,8,8,8], index: 0, kind: input, shape index: {}]   ;;  %s2072_s1 = inlined_call_operand.vmem [shape: f32[2,2,8], index: 1, kind: input, shape index: {}]   ;;  %s2073_s2 = inlined_call_operand.vmem [shape: f32[1,8], index: 2, kind: input, shape index: {}]   ;;  %s2074_s3 = inlined_call_operand.vmem [shape: f32[1,8], index: 3, kind: input, shape index: {}]   ;;  %s2075_s4 = inlined_call_operand.vmem [shape: f32[9,8,8], index: 4, kind: input, shape index: {}]   ;;  %s2076_s5 = inlined_call_operand.vmem [shape: bf16[2,8,8,8], index: 5, kind: output, shape index: {0}]   ;;  %s2077_s6 = inlined_call_operand.vmem [shape: f32[2,2,8], index: 6, kind: output, shape index: {1}]  }
   0x1   :  { %s1738_s23 = smov 0  }
   0x2 LB: > { %s29_s24 = sadd.s32 1, %s1691_s22  ;;  %p1425_p0 = scmp.ge.s32.totalorder %s1695_s23, 1  ;;  %s1695_s23 = sphi %s1738_s23, %s17_s23   ;;  %s1691_s22 = sphi %s1736_s22, %s2079_s22   ;;  %s1687_s21 = sphi %s1734_s21, %s2078_s21  }
   0x3   : > { %p31_p1 = scmp.ge.s32.totalorder %s29_s24, 2  ;;  %p233_p2 = scmp.lt.s32.totalorder %s1695_s23, 3 }
   0x5   : > { %s2081_s24 = smov (%p31_p1, %s29_s24), 0  ;;  %p234_p3 = pnand %p1425_p0, %p233_p2 }
   0x6   : > { %p270_p4 = scmp.lt.s32.totalorder (!%p234_p3), %s1687_s21, 1 }
   0x7   : > { %237 = sbr.rel (%p234_p3) target bundleno = 357 (0x165), region = 40 }
   0xc   : > { %v1431_v0 = vld [vmem:[%s2075_s4 + $0x8] sm:$0xff]  ;;  %vm442_vm0 = vcmask 1043456   ;;  %vm292_vm1 = vcmask 58368   ;;  %v420_v1 = vld [vmem:[%s2075_s4] sm:$0xff]  ;;  %s2083_s21 = smov (!%p270_p4, %s1687_s21), 1  ;;  %v1440_v10 = vld [vmem:[%s2075_s4 + $0x10] sm:$0xff]  ;;  %v314_v21 = vlaneseq }
   0xd   : > { %v428_v2 = vpack.c.bf16 %v1431_v0, %v1431_v0  ;;  %v294_v3 = vld [vmem:[%s2072_s1] sm:$0x3]  ;;  %v295_v4 = vld [vmem:[%s2072_s1 + $0x2] sm:$0x3]  ;;  %v1764_v5 = vpack.c.bf16 %v420_v1, %v420_v1  ;;  %s1430_s11 = sshll.u32 %s2083_s21, 1  ;;  %v622_v11 = vpack.c.bf16 %v1440_v10, %v1440_v10  ;;  %v1697_v13 = vmov 0.0  }
   0xe   : > { %v297_v6 = vsel %vm292_vm1, %v294_v3, 0.0  ;;  %v298_v7 = vsel %vm292_vm1, %v295_v4, 0.0  ;;  %s1782_s14 = scalar_lea.vmem %s2077_s6, %s1430_s11  ;;  %v1698_v19 = vmov 1966171168   ;;  %v315_v23 = vshrl.u32 %v314_v21, 7  ;;  %s1477_s15 = sshll.u32 %s2083_s21, 5 }
   0xf   : > { %1636 = vmatprep.subr.msk.bf16.mxu1 %vm442_vm0, %v428_v2  ;;  %1635 = vmatprep.subr.msk.bf16.mxu0 %vm442_vm0, %v428_v2  ;;  %v444_v8 = vsel %vm442_vm0, %v428_v2, 0  ;;  %v299_v9 = vadd.f32 %v298_v7, %v297_v6  ;;  %293 = vst.msk [vmem:[%s1782_s14] sm:$0x3] %vm292_vm1, %v1697_v13  ;;  %v312_v20 = vunpack.c.l.s4 %v1698_v19  ;;  %s274_s18 = scalar_lea.vmem %s2071_s0, %s1477_s15  ;;  %v307_v27 = vld [vmem:[%s2073_s2] sm:$0x1]  ;;  %v391_v46 = vrot.slane %v1697_v13, 7  ;;  %s2022_s19 = scalar_lea.vmem %s2076_s5, %s1477_s15 }
  0x10   : > { %1634 = vmatpush3.bf16.msra.mxu1 %v444_v8  ;;  %1544 = vmatpush3.bf16.msra.mxu0 %v444_v8  ;;  %v1480_v29 = vld [vmem:[%s274_s18] sm:$0xff]   ;;  %v1495_v30 = vld [vmem:[%s274_s18 + $0x8] sm:$0xff]   ;;  %v1496_v31 = vld [vmem:[%s274_s18 + $0x10] sm:$0xff]   ;;  %v350_v33 = vsub.s32 0, %v315_v23  ;;  %vm407_vm2 = vcmask 1040384   ;;  %v591_v47 = vrot.slane %v1697_v13, 1 }
  0x11   : > { %v300_v12 = vmul.f32 0.0078125, %v299_v9  ;;  %1637 = vmatprep.subr.msk.bf16.mxu1 %vm442_vm0, %v1764_v5  ;;  %1638 = vmatprep.subr.msk.bf16.mxu0 %vm442_vm0, %v622_v11  ;;  %v313_v22 = vunpack.c.0.s8 %v312_v20  ;;  %v1797_v34 = vld [vmem:[%s274_s18 + $0x18] sm:$0xff]   ;;  %v1481_v36 = vunpack.c.l.bf16 %v1480_v29  ;;  %v1486_v37 = vunpack.c.h.bf16 %v1495_v30  ;;  %v328_v39 = vld [vmem:[%s2074_s3] sm:$0x1] }
  0x12   : > { %v1489_v38 = vunpack.c.l.bf16 %v1496_v31  ;;  %v1482_v40 = vunpack.c.h.bf16 %v1480_v29  ;;  %v1485_v41 = vunpack.c.l.bf16 %v1495_v30  ;;  %v1490_v42 = vunpack.c.h.bf16 %v1496_v31  ;;  %v1445_v52 = vld [vmem:[%s2075_s4 + $0x18] sm:$0xff]  ;;  %v1450_v2 = vld [vmem:[%s2075_s4 + $0x20] sm:$0xff] }
  0x13   : > { %v301_v14 = vmul.f32 %v300_v12, %v300_v12  ;;  %v316_v24 = vsub.s32 %v313_v22, %v315_v23  ;;  %v1493_v43 = vunpack.c.l.bf16 %v1797_v34  ;;  %vm429_vm3 = vcmask 64512  }
  0x14   : > { %vm607_vm4 = vcmask 1046528   ;;  %v524_v58 = vsel %vm442_vm0, %v1764_v5, 0  ;;  %v636_v59 = vsel %vm442_vm0, %v622_v11, 0  ;;  %v1823_v60 = vsel %vm407_vm2, 0.0, %v391_v46  ;;  %v1455_v46 = vld [vmem:[%s2075_s4 + $0x28] sm:$0xff] }
  0x15   : > { %v303_v15 = vrot.slane %v301_v14, 7  ;;  %v721_v61 = vpack.c.bf16 %v1445_v52, %v1445_v52  ;;  %v1836_v6 = vsel %vm607_vm4, %v591_v47, 0.0  ;;  %v1460_v47 = vld [vmem:[%s2075_s4 + $0x30] sm:$0xff]  ;;  %vm1260_vm5 = vcmask 60416  }
  0x17   : > { %v305_v16 = vsub.f32 %v300_v12, %v303_v15  ;;  %v816_v15 = vpack.c.bf16 %v1450_v2, %v1450_v2 }
  0x19   : > { %v306_v17 = vmax.f32 %v305_v16, 0.0  ;;  %v830_v52 = vsel %vm442_vm0, %v816_v15, 0 }
  0x1b   : > { %v308_v18 = vadd.f32 1e-05, %v306_v17 }
  0x1d   : > { %1671 = vrsqrt.f32 %v308_v18 }
  0x2a   : > { %v1672_v25 = vpop.eup %1671 }
  0x2b   : > { %v317_v26 = vrot.slane %v1672_v25, %v316_v24 }
  0x2d   : > { %v318_v28 = vcombine.high %v317_v26, %v317_v26 }
  0x2f   : > { %v325_v32 = vrot.slane %v318_v28, %v316_v24 }
  0x31   : > { %v327_v35 = vmul.f32 %v325_v32, %v307_v27 }
  0x33   : > { %v329_v44 = vmul.f32 %v327_v35, %v300_v12  ;;  %v1803_v45 = vrot.slane %v327_v35, %v350_v33 }
  0x35   : > { %v330_v48 = vsub.f32 %v328_v39, %v329_v44  ;;  %v353_v49 = vmul.f32 %v1481_v36, %v1803_v45  ;;  %v356_v50 = vmul.f32 %v1486_v37, %v1803_v45  ;;  %v357_v51 = vmul.f32 %v1489_v38, %v1803_v45 }
  0x36   : > { %v354_v53 = vmul.f32 %v1482_v40, %v1803_v45  ;;  %v355_v54 = vmul.f32 %v1485_v41, %v1803_v45  ;;  %v358_v55 = vmul.f32 %v1490_v42, %v1803_v45  ;;  %v359_v56 = vmul.f32 %v1493_v43, %v1803_v45 }
  0x37   : > { %v1817_v57 = vrot.slane %v330_v48, %v350_v33  ;;  %v1494_v39 = vunpack.c.h.bf16 %v1797_v34  ;;  %v735_v48 = vsel %vm442_vm0, %v721_v61, 0 }
  0x39   : > { %v367_v62 = vadd.f32 %v1817_v57, %v353_v49  ;;  %v370_v63 = vadd.f32 %v1817_v57, %v356_v50  ;;  %v371_v0 = vadd.f32 %v1817_v57, %v357_v51  ;;  %v368_v1 = vadd.f32 %v1817_v57, %v354_v53 }
  0x3a   : > { %v369_v3 = vadd.f32 %v1817_v57, %v355_v54  ;;  %v372_v4 = vadd.f32 %v1817_v57, %v358_v55  ;;  %v373_v5 = vadd.f32 %v1817_v57, %v359_v56  ;;  %v914_v56 = vpack.c.bf16 %v1455_v46, %v1455_v46 }
  0x3b   : > { %v1838_v7 = vmax.f32 %v367_v62, 0.0  ;;  %v1840_v8 = vmax.f32 %v370_v63, 0.0  ;;  %v1842_v9 = vmax.f32 %v371_v0, 0.0  ;;  %v1844_v10 = vmax.f32 %v368_v1, 0.0 }
  0x3c   : > { %v1846_v11 = vmax.f32 %v369_v3, 0.0  ;;  %v1848_v12 = vmax.f32 %v372_v4, 0.0  ;;  %v1850_v14 = vmax.f32 %v373_v5, 0.0 }
  0x3d   : > { %v422_v16 = vpack.c.bf16 %v1838_v7, %v1697_v13  ;;  %v1856_v17 = vpack.c.bf16 %v1842_v9, %v1840_v8  ;;  %v392_v18 = vrot.slane %v1838_v7, 7  ;;  %v592_v19 = vrot.slane %v1838_v7, 1 }
  0x3e   : > { %v1862_v20 = vpack.c.bf16 %v1846_v11, %v1844_v10  ;;  %v1866_v21 = vpack.c.bf16 %v1850_v14, %v1848_v12  ;;  %v393_v22 = vrot.slane %v1844_v10, 7  ;;  %v394_v23 = vrot.slane %v1846_v11, 7 }
  0x3f   : > { %1545 = vmatprep.mubr.msk.bf16.mxu0 %vm429_vm3, %v422_v16  ;;  %1549 = vmatprep.mubr.msk.bf16.mxu1 %vm429_vm3, %v1856_v17  ;;  %v409_v24 = vsel %vm407_vm2, 0.0, %v392_v18  ;;  %v1875_v25 = vsel %vm607_vm4, %v592_v19, 0.0  ;;  %v593_v26 = vrot.slane %v1844_v10, 1  ;;  %v594_v27 = vrot.slane %v1846_v11, 1 }
  0x40   : > { %1546 = vmatmul.mubr.msk.bf16.vlgmr.msra.gmra.mxu0 %vm429_vm3, %v1862_v20  ;;  %1550 = vmatmul.mubr.msk.bf16.vlgmr.msra.gmra.mxu1 %vm429_vm3, %v1866_v21  ;;  %v416_v28 = vpack.c.bf16 %v409_v24, %v1823_v60  ;;  %v616_v29 = vpack.c.bf16 %v1875_v25, %v1836_v6  ;;  %v410_v30 = vsel %vm407_vm2, 0.0, %v393_v22  ;;  %v1888_v31 = vsel %vm407_vm2, 0.0, %v394_v23 }
  0x41   : > { %1554 = vmatpush3.bf16.msra.mxu1 %v524_v58  ;;  %1564 = vmatpush3.bf16.msra.mxu0 %v636_v59  ;;  %v1891_v32 = vsel %vm607_vm4, %v593_v26, 0.0  ;;  %v1894_v33 = vsel %vm607_vm4, %v594_v27, 0.0  ;;  %v395_v35 = vrot.slane %v1840_v8, 7  ;;  %v396_v36 = vrot.slane %v1842_v9, 7 }
  0x42   : > { %1555 = vmatprep.mubr.msk.bf16.mxu1 %vm429_vm3, %v416_v28  ;;  %1565 = vmatprep.mubr.msk.bf16.mxu0 %vm429_vm3, %v616_v29  ;;  %v595_v37 = vrot.slane %v1840_v8, 1  ;;  %v596_v38 = vrot.slane %v1842_v9, 1  ;;  %v1905_v40 = vpack.c.bf16 %v1888_v31, %v410_v30  ;;  %v1911_v42 = vpack.c.bf16 %v1894_v33, %v1891_v32 }
  0x43   : > { %1639 = vmatprep.subr.msk.bf16.mxu1 %vm442_vm0, %v721_v61  ;;  %1640 = vmatprep.subr.msk.bf16.mxu0 %vm442_vm0, %v816_v15  ;;  %v412_v41 = vsel %vm407_vm2, 0.0, %v395_v35  ;;  %v413_v43 = vsel %vm407_vm2, 0.0, %v396_v36  ;;  %v397_v49 = vrot.slane %v1848_v12, 7  ;;  %v398_v50 = vrot.slane %v1850_v14, 7 }
  0x44   : > { %v1915_v44 = vsel %vm607_vm4, %v595_v37, 0.0  ;;  %v1918_v34 = vsel %vm607_vm4, %v596_v38, 0.0  ;;  %v597_v51 = vrot.slane %v1848_v12, 1  ;;  %v418_v53 = vpack.c.bf16 %v413_v43, %v412_v41 }
  0x45   : > { %v1933_v54 = vpack.c.bf16 %v1918_v34, %v1915_v44  ;;  %v598_v55 = vrot.slane %v1850_v14, 1  ;;  %v1006_v58 = vpack.c.bf16 %v1460_v47, %v1460_v47  ;;  %v360_v59 = vmul.f32 %v1494_v39, %v1803_v45 }
  0x46   : > { %v414_v61 = vsel %vm407_vm2, 0.0, %v397_v49  ;;  %v415_v62 = vsel %vm407_vm2, 0.0, %v398_v50  ;;  %v614_v63 = vsel %vm607_vm4, %v597_v51, 0.0  ;;  %v715_v2 = vpack.c.bf16 %v410_v30, %v409_v24 }
  0x47   : > { %v615_v0 = vsel %vm607_vm4, %v598_v55, 0.0  ;;  %v419_v45 = vpack.c.bf16 %v415_v62, %v414_v61  ;;  %v810_v3 = vpack.c.bf16 %v1844_v10, %v1838_v7  ;;  %v374_v4 = vadd.f32 %v1817_v57, %v360_v59  ;;  %v1465_v7 = vld [vmem:[%s2075_s4 + $0x38] sm:$0xff]  ;;  %v1470_v57 = vld [vmem:[%s2075_s4 + $0x40] sm:$0xff] }
  0x48   : > { %1556 = vmatmul.mubr.msk.bf16.vlgmr.msra.gmra.mxu1 %vm429_vm3, %v1905_v40  ;;  %1566 = vmatmul.mubr.msk.bf16.vlgmr.msra.gmra.mxu0 %vm429_vm3, %v1911_v42  ;;  %v619_v1 = vpack.c.bf16 %v615_v0, %v614_v63  ;;  %v716_v15 = vpack.c.bf16 %v412_v41, %v1888_v31  ;;  %v811_v16 = vpack.c.bf16 %v1840_v8, %v1846_v11  ;;  %v928_v18 = vsel %vm442_vm0, %v914_v56, 0 }
  0x49   : > { %1574 = vmatpush3.bf16.msra.mxu1 %v735_v48  ;;  %1584 = vmatpush3.bf16.msra.mxu0 %v830_v52  ;;  %v382_v5 = vmax.f32 %v374_v4, 0.0  ;;  %v1011_v19 = vsel %vm442_vm0, %v1006_v58, 0  ;;  %v717_v22 = vpack.c.bf16 %v414_v61, %v413_v43  ;;  %v812_v23 = vpack.c.bf16 %v1848_v12, %v1842_v9 }
  0x4a   : > { %1559 = vmatprep.mubr.msk.bf16.mxu1 %vm429_vm3, %v418_v53  ;;  %1569 = vmatprep.mubr.msk.bf16.mxu0 %vm429_vm3, %v1933_v54  ;;  %v1089_v24 = vpack.c.bf16 %v1465_v7, %v1465_v7  ;;  %v1172_v26 = vpack.c.bf16 %v1470_v57, %v1470_v57  ;;  %v908_v12 = vpack.c.bf16 %v1891_v32, %v1875_v25 }
  0x4b   : > { %1641 = vmatprep.subr.msk.bf16.mxu1 %vm442_vm0, %v914_v56  ;;  %1642 = vmatprep.subr.msk.bf16.mxu0 %vm442_vm0, %v1006_v58  ;;  %v712_v10 = vrot.slane %v382_v5, 7  ;;  %v813_v9 = vpack.c.bf16 %v382_v5, %v1850_v14  ;;  %v909_v27 = vpack.c.bf16 %v1915_v44, %v1894_v33  ;;  %v905_v28 = vrot.slane %v382_v5, 1 }
  0x4c   : > { %v1094_v29 = vsel %vm442_vm0, %v1089_v24, 0  ;;  %v1177_v14 = vsel %vm442_vm0, %v1172_v26, 0  ;;  %v910_v30 = vpack.c.bf16 %v614_v63, %v1918_v34 }
  0x4d   : > { %v714_v8 = vsel %vm407_vm2, 0.0, %v712_v10  ;;  %v907_v25 = vsel %vm607_vm4, %v905_v28, 0.0 }
  0x4e   : > { %v718_v11 = vpack.c.bf16 %v714_v8, %v415_v62  ;;  %v911_v31 = vpack.c.bf16 %v907_v25, %v615_v0  ;;  %v1003_v32 = vpack.c.bf16 %v1823_v60, %v714_v8  ;;  %v1086_v60 = vpack.c.bf16 %v1697_v13, %v382_v5 }
  0x4f   : > { %v1169_v33 = vpack.c.bf16 %v1836_v6, %v907_v25 }
  0x50   : > { %1560 = vmatmul.mubr.msk.bf16.gmra.mxu1 %vm429_vm3, %v419_v45  ;;  %1570 = vmatmul.mubr.msk.bf16.gmra.mxu0 %vm429_vm3, %v619_v1 }
  0x51   : > { %1575 = vmatprep.mubr.msk.bf16.mxu1 %vm429_vm3, %v715_v2  ;;  %1585 = vmatprep.mubr.msk.bf16.mxu0 %vm429_vm3, %v810_v3 }
  0x58   : > { %1576 = vmatmul.mubr.msk.bf16.vlgmr.msra.gmra.mxu1 %vm429_vm3, %v716_v15  ;;  %1586 = vmatmul.mubr.msk.bf16.vlgmr.msra.gmra.mxu0 %vm429_vm3, %v811_v16 }
  0x59   : > { %1594 = vmatpush3.bf16.msra.mxu1 %v928_v18  ;;  %1604 = vmatpush3.bf16.msra.mxu0 %v1011_v19 }
  0x5a   : > { %1579 = vmatprep.mubr.msk.bf16.mxu1 %vm429_vm3, %v717_v22  ;;  %1589 = vmatprep.mubr.msk.bf16.mxu0 %vm429_vm3, %v812_v23 }
  0x5b   : > { %1643 = vmatprep.subr.msk.bf16.mxu1 %vm442_vm0, %v1089_v24  ;;  %1644 = vmatprep.subr.msk.bf16.mxu0 %vm442_vm0, %v1172_v26 }
  0x60   : > { %1580 = vmatmul.mubr.msk.bf16.gmra.mxu1 %vm429_vm3, %v718_v11  ;;  %1590 = vmatmul.mubr.msk.bf16.gmra.mxu0 %vm429_vm3, %v813_v9 }
  0x61   : > { %1595 = vmatprep.mubr.msk.bf16.mxu1 %vm429_vm3, %v908_v12  ;;  %1605 = vmatprep.mubr.msk.bf16.mxu0 %vm429_vm3, %v1905_v40 }
  0x68   : > { %1596 = vmatmul.mubr.msk.bf16.vlgmr.msra.gmra.mxu1 %vm429_vm3, %v909_v27  ;;  %1606 = vmatmul.mubr.msk.bf16.vlgmr.msra.gmra.mxu0 %vm429_vm3, %v418_v53 }
  0x69   : > { %1614 = vmatpush3.bf16.msra.mxu1 %v1094_v29  ;;  %1624 = vmatpush3.bf16.msra.mxu0 %v1177_v14 }
  0x6a   : > { %1599 = vmatprep.mubr.msk.bf16.mxu1 %vm429_vm3, %v910_v30  ;;  %1609 = vmatprep.mubr.msk.bf16.mxu0 %vm429_vm3, %v419_v45 }
  0x70   : > { %1600 = vmatmul.mubr.msk.bf16.gmra.mxu1 %vm429_vm3, %v911_v31  ;;  %1610 = vmatmul.mubr.msk.bf16.gmra.mxu0 %vm429_vm3, %v1003_v32 }
  0x71   : > { %1615 = vmatprep.mubr.msk.bf16.mxu1 %vm429_vm3, %v1862_v20  ;;  %1625 = vmatprep.mubr.msk.bf16.mxu0 %vm429_vm3, %v1911_v42 }
  0x78   : > { %1616 = vmatmul.mubr.msk.bf16.vlgmr.msra.gmra.mxu1 %vm429_vm3, %v1856_v17  ;;  %1626 = vmatmul.mubr.msk.bf16.vlgmr.msra.gmra.mxu0 %vm429_vm3, %v1933_v54 }
  0x79   : > { %1619 = vmatprep.mubr.msk.bf16.mxu1 %vm429_vm3, %v1866_v21  ;;  %1629 = vmatprep.mubr.msk.bf16.mxu0 %vm429_vm3, %v619_v1 }
  0x80   : > { %1620 = vmatmul.mubr.msk.bf16.gmra.mxu1 %vm429_vm3, %v1086_v60  ;;  %1630 = vmatmul.mubr.msk.bf16.gmra.mxu0 %vm429_vm3, %v1169_v33 }
 0x100   : > { %v1547_v20 = vpop.f32.mrf.mxu0  ;;  %v1551_v35 = vpop.f32.mrf.mxu1 }
 0x102   : > { %v480_v36 = vpop.f32.mrf.mxu0  ;;  %v496_v17 = vpop.f32.mrf.mxu1 }
 0x104   : > { %v1548_v37 = vpop.f32.mrf.mxu0  ;;  %v1552_v38 = vpop.f32.mrf.mxu1 }
 0x106   : > { %v483_v39 = vpop.f32.mrf.mxu0  ;;  %v499_v40 = vpop.f32.mrf.mxu1 }
 0x108   : > { %v1557_v41 = vpop.f32.mrf.mxu1  ;;  %v1567_v21 = vpop.f32.mrf.mxu0 }
 0x109   : > { %v569_v16 = vadd.f32 %v1557_v41, %v1547_v20 }
 0x10a   : > { %v560_v42 = vpop.f32.mrf.mxu1  ;;  %v672_v43 = vpop.f32.mrf.mxu0 }
 0x10b   : > { %v561_v10 = vadd.f32 %v560_v42, %v480_v36  ;;  %v705_v22 = vadd.f32 %v1567_v21, %v569_v16 }
 0x10c   : > { %v1558_v44 = vpop.f32.mrf.mxu1  ;;  %v1568_v13 = vpop.f32.mrf.mxu0 }
 0x10d   : > { %v572_v23 = vadd.f32 %v1558_v44, %v1548_v37  ;;  %v703_v8 = vadd.f32 %v672_v43, %v561_v10 }
 0x10e   : > { %v563_v34 = vpop.f32.mrf.mxu1  ;;  %v675_v6 = vpop.f32.mrf.mxu0 }
 0x10f   : > { %v564_v9 = vadd.f32 %v563_v34, %v483_v39  ;;  %v706_v14 = vadd.f32 %v1568_v13, %v572_v23 }
 0x110   : > { %v1561_v46 = vpop.f32.mrf.mxu1  ;;  %v1571_v47 = vpop.f32.mrf.mxu0 }
 0x111   : > { %v585_v28 = vadd.f32 %v1561_v46, %v1551_v35  ;;  %v704_v60 = vadd.f32 %v675_v6, %v564_v9 }
 0x112   : > { %v576_v48 = vpop.f32.mrf.mxu1  ;;  %v688_v49 = vpop.f32.mrf.mxu0 }
 0x113   : > { %v577_v31 = vadd.f32 %v576_v48, %v496_v17  ;;  %v709_v37 = vadd.f32 %v1571_v47, %v585_v28 }
 0x114   : > { %v1562_v50 = vpop.f32.mrf.mxu1  ;;  %v1572_v51 = vpop.f32.mrf.mxu0 }
 0x115   : > { %v588_v33 = vadd.f32 %v1562_v50, %v1552_v38 }
 0x116   : > { %v579_v52 = vpop.f32.mrf.mxu1  ;;  %v691_v53 = vpop.f32.mrf.mxu0 }
 0x117   : > { %v580_v21 = vadd.f32 %v579_v52, %v499_v40  ;;  %v710_v13 = vadd.f32 %v1572_v51, %v588_v33 }
 0x118   : > { %v1577_v54 = vpop.f32.mrf.mxu1  ;;  %v1587_v55 = vpop.f32.mrf.mxu0 }
 0x119   : > { %v804_v11 = vadd.f32 %v1577_v54, %v705_v22  ;;  %v707_v54 = vadd.f32 %v688_v49, %v577_v31  ;;  %v708_v48 = vadd.f32 %v691_v53, %v580_v21 }
 0x11a   : > { %v771_v56 = vpop.f32.mrf.mxu1  ;;  %v866_v58 = vpop.f32.mrf.mxu0 }
 0x11b   : > { %v802_v29 = vadd.f32 %v771_v56, %v703_v8  ;;  %v899_v32 = vadd.f32 %v1587_v55, %v804_v11 }
 0x11c   : > { %v1578_v59 = vpop.f32.mrf.mxu1  ;;  %v1588_v61 = vpop.f32.mrf.mxu0 }
 0x11d   : > { %v805_v20 = vadd.f32 %v1578_v59, %v706_v14  ;;  %v897_v42 = vadd.f32 %v866_v58, %v802_v29 }
 0x11e   : > { %v774_v62 = vpop.f32.mrf.mxu1  ;;  %v869_v63 = vpop.f32.mrf.mxu0 }
 0x11f   : > { %v803_v44 = vadd.f32 %v774_v62, %v704_v60  ;;  %v900_v56 = vadd.f32 %v1588_v61, %v805_v20 }
 0x120   : > { %v1581_v0 = vpop.f32.mrf.mxu1  ;;  %v1591_v45 = vpop.f32.mrf.mxu0 }
 0x121   : > { %v808_v35 = vadd.f32 %v1581_v0, %v709_v37  ;;  %v898_v50 = vadd.f32 %v869_v63, %v803_v44 }
 0x122   : > { %v787_v1 = vpop.f32.mrf.mxu1  ;;  %v882_v2 = vpop.f32.mrf.mxu0 }
 0x123   : > { %v806_v6 = vadd.f32 %v787_v1, %v707_v54  ;;  %v903_v58 = vadd.f32 %v1591_v45, %v808_v35 }
 0x124   : > { %v1582_v3 = vpop.f32.mrf.mxu1  ;;  %v2013_v4 = vpop.f32.mrf.mxu0 }
 0x125   : > { %v809_v55 = vadd.f32 %v1582_v3, %v710_v13  ;;  %v901_v51 = vadd.f32 %v882_v2, %v806_v6 }
 0x126   : > { %v790_v5 = vpop.f32.mrf.mxu1  ;;  %v2015_v15 = vpop.f32.mrf.mxu0 }
 0x127   : > { %v807_v59 = vadd.f32 %v790_v5, %v708_v48  ;;  %v904_v53 = vadd.f32 %v2013_v4, %v809_v55 }
 0x128   : > { %v1597_v7 = vpop.f32.mrf.mxu1  ;;  %v1607_v57 = vpop.f32.mrf.mxu0 }
 0x129   : > { %v997_v43 = vadd.f32 %v1597_v7, %v899_v32  ;;  %v902_v3 = vadd.f32 %v2015_v15, %v807_v59 }
 0x12a   : > { %v964_v18 = vpop.f32.mrf.mxu1  ;;  %v1047_v19 = vpop.f32.mrf.mxu0 }
 0x12b   : > { %v995_v46 = vadd.f32 %v964_v18, %v897_v42  ;;  %v1080_v38 = vadd.f32 %v1607_v57, %v997_v43 }
 0x12c   : > { %v1598_v24 = vpop.f32.mrf.mxu1  ;;  %v1608_v26 = vpop.f32.mrf.mxu0 }
 0x12d   : > { %v998_v47 = vadd.f32 %v1598_v24, %v900_v56  ;;  %v1078_v62 = vadd.f32 %v1047_v19, %v995_v46 }
 0x12e   : > { %v967_v12 = vpop.f32.mrf.mxu1  ;;  %v1050_v27 = vpop.f32.mrf.mxu0 }
 0x12f   : > { %v996_v49 = vadd.f32 %v967_v12, %v898_v50  ;;  %v1081_v63 = vadd.f32 %v1608_v26, %v998_v47 }
 0x130   : > { %v1601_v30 = vpop.f32.mrf.mxu1  ;;  %v1611_v25 = vpop.f32.mrf.mxu0 }
 0x131   : > { %v1001_v61 = vadd.f32 %v1601_v30, %v903_v58  ;;  %v1079_v19 = vadd.f32 %v1050_v27, %v996_v49 }
 0x132   : > { %v980_v36 = vpop.f32.mrf.mxu1  ;;  %v1063_v41 = vpop.f32.mrf.mxu0 }
 0x133   : > { %v999_v5 = vadd.f32 %v980_v36, %v901_v51  ;;  %v1084_v9 = vadd.f32 %v1611_v25, %v1001_v61 }
 0x134   : > { %v1602_v39 = vpop.f32.mrf.mxu1  ;;  %v1612_v34 = vpop.f32.mrf.mxu0 }
 0x135   : > { %v1002_v23 = vadd.f32 %v1602_v39, %v904_v53  ;;  %v1082_v15 = vadd.f32 %v1063_v41, %v999_v5 }
 0x136   : > { %v983_v16 = vpop.f32.mrf.mxu1  ;;  %v1066_v17 = vpop.f32.mrf.mxu0 }
 0x137   : > { %v1000_v12 = vadd.f32 %v983_v16, %v902_v3  ;;  %v1085_v27 = vadd.f32 %v1612_v34, %v1002_v23 }
 0x138   : > { %v1617_v40 = vpop.f32.mrf.mxu1  ;;  %v1627_v52 = vpop.f32.mrf.mxu0 }
 0x139   : > { %v1163_v7 = vadd.f32 %v1617_v40, %v1080_v38  ;;  %v1083_v25 = vadd.f32 %v1066_v17, %v1000_v12 }
 0x13a   : > { %v1130_v0 = vpop.f32.mrf.mxu1  ;;  %v1213_v10 = vpop.f32.mrf.mxu0 }
 0x13b   : > { %v1246_v18 = vadd.f32 %v1627_v52, %v1163_v7  ;;  %v1161_v22 = vadd.f32 %v1130_v0, %v1078_v62 }
 0x13c   : > { %v1618_v45 = vpop.f32.mrf.mxu1  ;;  %v1628_v1 = vpop.f32.mrf.mxu0 }
 0x13d   : > { %v1254_v2 = vpack.c.bf16 %v1246_v18, %v1246_v18  ;;  %v1244_v57 = vadd.f32 %v1213_v10, %v1161_v22  ;;  %v1164_v24 = vadd.f32 %v1618_v45, %v1081_v63  ;;  %v1292_v36 = vmul.f32 %v1246_v18, %v1246_v18 }
 0x13e   : > { %v1133_v8 = vpop.f32.mrf.mxu1  ;;  %v1216_v11 = vpop.f32.mrf.mxu0  ;;  %v1272_v54 = vsel %vm429_vm3, %v1246_v18, 0.0 }
 0x13f   : > { %1263 = vst.msk [vmem:[%s2022_s19 + $0x8] sm:$0xf] %vm1260_vm5, %v1254_v2  ;;  %v1252_v4 = vpack.c.bf16 %v1244_v57, %v1244_v57  ;;  %v1247_v26 = vadd.f32 %v1628_v1, %v1164_v24  ;;  %v1162_v28 = vadd.f32 %v1133_v8, %v1079_v19  ;;  %v1290_v30 = vmul.f32 %v1244_v57, %v1244_v57 }
 0x140   : > { %v1621_v29 = vpop.f32.mrf.mxu1  ;;  %v1631_v14 = vpop.f32.mrf.mxu0  ;;  %v1269_v42 = vsel %vm429_vm3, %v1244_v57, 0.0  ;;  %v1301_v38 = vsel %vm429_vm3, %v1292_v36, 0.0 }
 0x141   : > { %1261 = vst.msk [vmem:[%s2022_s19] sm:$0xf] %vm1260_vm5, %v1252_v4  ;;  %v1167_v31 = vadd.f32 %v1621_v29, %v1084_v9  ;;  %v1255_v32 = vpack.c.bf16 %v1247_v26, %v1247_v26  ;;  %v1245_v60 = vadd.f32 %v1216_v11, %v1162_v28  ;;  %v1298_v35 = vsel %vm429_vm3, %v1290_v30, 0.0 }
 0x142   : > { %v1146_v33 = vpop.f32.mrf.mxu1  ;;  %v1229_v20 = vpop.f32.mrf.mxu0  ;;  %v1293_v56 = vmul.f32 %v1247_v26, %v1247_v26  ;;  %v1274_v40 = vsel %vm429_vm3, %v1247_v26, 0.0 }
 0x143   : > { %v1250_v37 = vadd.f32 %v1631_v14, %v1167_v31  ;;  %v1165_v21 = vadd.f32 %v1146_v33, %v1082_v15  ;;  %1264 = vst.msk [vmem:[%s2022_s19 + $0xc] sm:$0xf] %vm1260_vm5, %v1255_v32  ;;  %v1253_v43 = vpack.c.bf16 %v1245_v60, %v1245_v60  ;;  %v1270_v41 = vsel %vm429_vm3, %v1245_v60, 0.0 }
 0x144   : > { %v1291_v44 = vmul.f32 %v1245_v60, %v1245_v60  ;;  %v1622_v39 = vpop.f32.mrf.mxu1  ;;  %v1632_v34 = vpop.f32.mrf.mxu0  ;;  %v1271_v46 = vadd.f32 %v1270_v41, %v1269_v42  ;;  %v1303_v10 = vsel %vm429_vm3, %v1293_v56, 0.0 }
 0x145   : > { %v1258_v13 = vpack.c.bf16 %v1250_v37, %v1250_v37  ;;  %1262 = vst.msk [vmem:[%s2022_s19 + $0x4] sm:$0xf] %vm1260_vm5, %v1253_v43  ;;  %v1248_v17 = vadd.f32 %v1229_v20, %v1165_v21  ;;  %v1168_v48 = vadd.f32 %v1622_v39, %v1085_v27  ;;  %v1296_v45 = vmul.f32 %v1250_v37, %v1250_v37 }
 0x146   : > { %v1299_v16 = vsel %vm429_vm3, %v1291_v44, 0.0  ;;  %v1149_v6 = vpop.f32.mrf.mxu1  ;;  %v1273_v50 = vadd.f32 %v1272_v54, %v1271_v46  ;;  %v1232_v62 = vpop.f32.mrf.mxu0  ;;  %v1280_v57 = vsel %vm429_vm3, %v1250_v37, 0.0 }
 0x147   : > { %v1300_v55 = vadd.f32 %v1299_v16, %v1298_v35  ;;  %1267 = vst.msk [vmem:[%s2022_s19 + $0x18] sm:$0xf] %vm1260_vm5, %v1258_v13  ;;  %v1166_v47 = vadd.f32 %v1149_v6, %v1083_v25  ;;  %v1256_v52 = vpack.c.bf16 %v1248_v17, %v1248_v17  ;;  %v1294_v58 = vmul.f32 %v1248_v17, %v1248_v17  ;;  %v1320_v25 = vld [vmem:[%s1782_s14] sm:$0x3] }
 0x148   : > { %v1251_v59 = vadd.f32 %v1632_v34, %v1168_v48  ;;  %v1275_v49 = vadd.f32 %v1274_v40, %v1273_v50  ;;  %v1276_v51 = vsel %vm429_vm3, %v1248_v17, 0.0  ;;  %v1309_v11 = vsel %vm429_vm3, %v1296_v45, 0.0 }
 0x149   : > { %v1302_v7 = vadd.f32 %v1301_v38, %v1300_v55  ;;  %v1249_v0 = vadd.f32 %v1232_v62, %v1166_v47  ;;  %1265 = vst.msk [vmem:[%s2022_s19 + $0x10] sm:$0xf] %vm1260_vm5, %v1256_v52  ;;  %v1305_v1 = vsel %vm429_vm3, %v1294_v58, 0.0 }
 0x14a   : > { %v1259_v61 = vpack.c.bf16 %v1251_v59, %v1251_v59  ;;  %v1277_v18 = vadd.f32 %v1276_v51, %v1275_v49  ;;  %v1297_v19 = vmul.f32 %v1251_v59, %v1251_v59  ;;  %v1282_v9 = vsel %vm429_vm3, %v1251_v59, 0.0 }
 0x14b   : > { %v1304_v22 = vadd.f32 %v1303_v10, %v1302_v7  ;;  %v1257_v53 = vpack.c.bf16 %v1249_v0, %v1249_v0  ;;  %v1278_v63 = vsel %vm429_vm3, %v1249_v0, 0.0  ;;  %v1295_v3 = vmul.f32 %v1249_v0, %v1249_v0 }
 0x14c   : > { %1268 = vst.msk [vmem:[%s2022_s19 + $0x1c] sm:$0xf] %vm1260_vm5, %v1259_v61  ;;  %v1279_v2 = vadd.f32 %v1278_v63, %v1277_v18  ;;  %v1311_v26 = vsel %vm429_vm3, %v1297_v19, 0.0 }
 0x14d   : > { %v1306_v5 = vadd.f32 %v1305_v1, %v1304_v22  ;;  %1266 = vst.msk [vmem:[%s2022_s19 + $0x14] sm:$0xf] %vm1260_vm5, %v1257_v53  ;;  %v1307_v23 = vsel %vm429_vm3, %v1295_v3, 0.0 }
 0x14e   : > { %v1281_v24 = vadd.f32 %v1280_v57, %v1279_v2 }
 0x14f   : > { %v1308_v8 = vadd.f32 %v1307_v23, %v1306_v5 }
 0x150   : > { %v1283_v12 = vadd.f32 %v1282_v9, %v1281_v24 }
 0x151   : > { %v1310_v4 = vadd.f32 %v1309_v11, %v1308_v8 }
 0x152   : > { %v1284_v28 = vrot.slane %v1283_v12, 4 }
 0x153   : > { %v1312_v29 = vadd.f32 %v1311_v26, %v1310_v4 }
 0x154   : > { %v1285_v14 = vadd.f32 %v1284_v28, %v1283_v12 }
 0x155   : > { %v1313_v15 = vrot.slane %v1312_v29, 4 }
 0x156   : > { %v1286_v30 = vrot.slane %v1285_v14, 2 }
 0x157   : > { %v1314_v31 = vadd.f32 %v1313_v15, %v1312_v29 }
 0x158   : > { %v1287_v27 = vadd.f32 %v1286_v30, %v1285_v14 }
 0x159   : > { %v1315_v32 = vrot.slane %v1314_v31, 2 }
 0x15a   : > { %v1288_v60 = vrot.slane %v1287_v27, 1 }
 0x15b   : > { %v1316_v33 = vadd.f32 %v1315_v32, %v1314_v31 }
 0x15c   : > { %v1289_v36 = vadd.f32 %v1288_v60, %v1287_v27 }
 0x15d   : > { %v1317_v20 = vrot.slane %v1316_v33, 1 }
 0x15f   : > { %v1318_v37 = vadd.f32 %v1317_v20, %v1316_v33 }
 0x161   : > { %v1319_v21 = vsel %vm407_vm2, %v1289_v36, %v1318_v37 }
 0x162   : > { %v1321_v42 = vadd.f32 %v1320_v25, %v1319_v21 }
 0x164   : > { %1322 = vst.msk [vmem:[%s1782_s14] sm:$0x3] %vm292_vm1, %v1321_v42 }
 0x165 PF: > { %s17_s23 = sadd.s32 1, %s1695_s23   ;;  %s2078_s21 = smov %s1691_s22 }
 0x166   : > { %p14_p5 = scmp.ge.s32.totalorder %s17_s23, 4   ;;  %s2079_s22 = smov %s2081_s24 }
 0x168   :  { %16 = sbr.rel (!%p14_p5) target bundleno = 2 (0x2), region = 94 }

</bundles_post_ra>
